<compile_context>
chip_gen: v5e
topology: v5e:2x2
jax: 0.10.0
libtpu: 0.0.40
codegen_flags: <defaults>
</compile_context>

<pallas_src>
import functools
import math

import jax
import jax.numpy as jnp
from jax import lax
from jax.experimental import pallas as pl
from jax.experimental.pallas import tpu as pltpu

MARGIN = 0.3


def _round_up(a, b):
    return ((a + b - 1) // b) * b


def _triplet_mine_kernel(x_row_ref, x_col_ref, sq_row_ref, sq_col_ref,
                         t_row_ref, t_col_ref, valid_col_ref,
                         loss_ref, ap_ref, an_ref, *, margin):
    j = pl.program_id(1)

    @pl.when(j == 0)
    def _():
        ap_ref[...] = jnp.full(ap_ref.shape, -jnp.inf, jnp.float32)
        an_ref[...] = jnp.full(an_ref.shape, jnp.inf, jnp.float32)

    # Squared pairwise distances for this (TM, TN) tile:
    #   ||xi||^2 + ||xj||^2 - 2 <xi, xj>
    # Contract feature axis of both operands directly (no transpose, MXU-fed).
    gram = lax.dot_general(
        x_row_ref[...], x_col_ref[...],
        dimension_numbers=(((1,), (1,)), ((), ())),
        preferred_element_type=jnp.float32)                       # (TM, TN)
    d2 = sq_row_ref[...] + sq_col_ref[...] - 2.0 * gram           # (TM, TN)

    same = t_row_ref[...] == t_col_ref[...]                       # (TM, TN) bool
    valid = valid_col_ref[...] > 0.5                              # (1, TN)  bool

    pos_mask = jnp.logical_and(same, valid)
    neg_mask = jnp.logical_and(jnp.logical_not(same), valid)

    # Mine on squared distances; fills must be applied BEFORE any sqrt so the
    # sentinel never hits the transcendental path.
    ap_tile = jnp.max(jnp.where(pos_mask, d2, -jnp.inf), axis=1, keepdims=True)
    an_tile = jnp.min(jnp.where(neg_mask, d2, jnp.inf), axis=1, keepdims=True)

    ap_ref[...] = jnp.maximum(ap_ref[...], ap_tile)
    an_ref[...] = jnp.minimum(an_ref[...], an_tile)

    @pl.when(j == pl.num_programs(1) - 1)
    def _():
        # sqrt is monotonic, so mining on squared distances is exact; clamp and
        # sqrt only the mined per-row values (2*TM ops instead of TM*TN).
        d_ap = jnp.sqrt(jnp.maximum(ap_ref[...], 1e-12))
        d_an = jnp.sqrt(jnp.maximum(an_ref[...], 1e-12))
        # MarginRankingLoss with y = 1: max(0, -(d_an - d_ap) + margin)
        loss_ref[...] = jnp.maximum(d_ap - d_an + margin, 0.0)


def triplet_loss(inputs, targets, *, margin=MARGIN, tile_m=256, tile_n=256):
    """inputs: (n, d) float, targets: (n,) int — returns scalar float32 loss."""
    n, d = inputs.shape
    d_pad = _round_up(d, 128)                     # lane axis multiple of 128
    n_min = _round_up(n, 128)
    tm = min(tile_m, n_min)
    tn = min(tile_n, n_min)
    n_pad = _round_up(n, math.lcm(tm, tn))

    x = jnp.pad(inputs.astype(jnp.float32),
                ((0, n_pad - n), (0, d_pad - d)))
    t = jnp.pad(targets.astype(jnp.int32), (0, n_pad - n))
    sq = jnp.sum(x * x, axis=1)
    sq_row = sq.reshape(n_pad, 1)
    sq_col = sq.reshape(1, n_pad)
    t_row = t.reshape(n_pad, 1)
    t_col = t.reshape(1, n_pad)
    valid_col = (jnp.arange(n_pad) < n).astype(jnp.float32).reshape(1, n_pad)

    grid = (n_pad // tm, n_pad // tn)
    kernel = functools.partial(_triplet_mine_kernel, margin=margin)

    per_row = pl.pallas_call(
        kernel,
        out_shape=jax.ShapeDtypeStruct((n_pad, 1), jnp.float32),
        grid_spec=pltpu.PrefetchScalarGridSpec(
            num_scalar_prefetch=0,
            grid=grid,
            in_specs=[
                pl.BlockSpec((tm, d_pad), lambda i, j: (i, 0)),   # x  (row tiles)
                pl.BlockSpec((tn, d_pad), lambda i, j: (j, 0)),   # x  (col tiles)
                pl.BlockSpec((tm, 1),     lambda i, j: (i, 0)),   # ||x||^2 rows
                pl.BlockSpec((1, tn),     lambda i, j: (0, j)),   # ||x||^2 cols
                pl.BlockSpec((tm, 1),     lambda i, j: (i, 0)),   # targets rows
                pl.BlockSpec((1, tn),     lambda i, j: (0, j)),   # targets cols
                pl.BlockSpec((1, tn),     lambda i, j: (0, j)),   # col-valid mask
            ],
            out_specs=pl.BlockSpec((tm, 1), lambda i, j: (i, 0)),
            scratch_shapes=[pltpu.VMEM((tm, 1), jnp.float32),     # ap^2 running max
                            pltpu.VMEM((tm, 1), jnp.float32)],    # an^2 running min
        ),
        compiler_params=pltpu.CompilerParams(
            dimension_semantics=("parallel", "arbitrary")),
    )(x, x, sq_row, sq_col, t_row, t_col, valid_col)

    # Mean over the true (unpadded) rows; done wrapper-side so the kernel does
    # not need an in-kernel cross-sublane reduce / masked scalar store.
    return jnp.mean(per_row[:n, 0])


def _reference_triplet_loss(inputs, targets, margin=MARGIN):
    # Plain-JAX reference mirroring the PyTorch forward.
    x = inputs.astype(jnp.float32)
    sq = jnp.sum(x * x, axis=1, keepdims=True)
    gram = lax.dot_general(x, x,
                           dimension_numbers=(((1,), (1,)), ((), ())),
                           preferred_element_type=jnp.float32)
    dist = jnp.sqrt(jnp.maximum(sq + sq.T - 2.0 * gram, 1e-12))
    mask = targets[:, None] == targets[None, :]
    dist_ap = jnp.max(jnp.where(mask, dist, -jnp.inf), axis=1)
    dist_an = jnp.min(jnp.where(mask, jnp.inf, dist), axis=1)
    return jnp.mean(jnp.maximum(dist_ap - dist_an + margin, 0.0))


if __name__ == "__main__":
    key = jax.random.PRNGKey(0)
    n, d = 8, 32  # batch=8, feature dim=32
    inputs = jax.random.normal(key, (n, d), dtype=jnp.float32)
    targets = jnp.array([0, 0, 1, 1, 2, 2, 3, 3], dtype=jnp.int32)

    loss = jax.block_until_ready(triplet_loss(inputs, targets))
    ref = _reference_triplet_loss(inputs, targets)
    assert jnp.allclose(loss, ref, atol=1e-3, rtol=1e-3), (loss, ref)
    print("KERNEL_OK")
</pallas_src>

<mosaic_0001>
module attributes {stable_mosaic.version = 11 : i64} {
  func.func @_triplet_mine_kernel(%arg0: i32, %arg1: i32, %arg2: memref<128x128xf32, #tpu.memory_space<vmem>>, %arg3: memref<128x128xf32, #tpu.memory_space<vmem>>, %arg4: memref<128x1xf32, #tpu.memory_space<vmem>>, %arg5: memref<1x128xf32, #tpu.memory_space<vmem>>, %arg6: memref<128x1xi32, #tpu.memory_space<vmem>>, %arg7: memref<1x128xi32, #tpu.memory_space<vmem>>, %arg8: memref<1x128xf32, #tpu.memory_space<vmem>>, %arg9: memref<128x1xf32, #tpu.memory_space<vmem>>, %arg10: memref<128x1xf32, #tpu.memory_space<vmem>>, %arg11: memref<128x1xf32, #tpu.memory_space<vmem>>) attributes {dimension_semantics = [#tpu.dimension_semantics<parallel>, #tpu.dimension_semantics<arbitrary>], iteration_bounds = array<i64: 1, 1>, scalar_prefetch = 0 : i64, scratch_operands = 2 : i64, tpu.core_type = #tpu.core_type<tc>, window_params = [{transform_indices = @transform_0, window_bounds = array<i64: 128, 128>}, {transform_indices = @transform_1, window_bounds = array<i64: 128, 128>}, {transform_indices = @transform_2, window_bounds = array<i64: 128, 1>}, {transform_indices = @transform_3, window_bounds = array<i64: 1, 128>}, {transform_indices = @transform_4, window_bounds = array<i64: 128, 1>}, {transform_indices = @transform_5, window_bounds = array<i64: 1, 128>}, {transform_indices = @transform_6, window_bounds = array<i64: 1, 128>}, {transform_indices = @transform_7, window_bounds = array<i64: 128, 1>}]} {
    %c0_i32 = arith.constant 0 : i32
    %0 = arith.cmpi eq, %arg1, %c0_i32 : i32
    %1 = arith.extui %0 : i1 to i32
    %c0_i32_0 = arith.constant 0 : i32
    %2 = arith.cmpi ne, %1, %c0_i32_0 : i32
    scf.if %2 {
      %cst_31 = arith.constant 0xFF800000 : f32
      %44 = vector.broadcast %cst_31 : f32 to vector<128x1xf32>
      %c0_32 = arith.constant 0 : index
      %c0_33 = arith.constant 0 : index
      %45 = vector.load %arg10[%c0_32, %c0_33] : memref<128x1xf32, #tpu.memory_space<vmem>>, vector<128x1xf32>
      tpu.vector_store %arg10[%c0_32, %c0_33], %44 {strides = array<i32>} : memref<128x1xf32, #tpu.memory_space<vmem>>, vector<128x1xf32>,
      %cst_34 = arith.constant 0x7F800000 : f32
      %46 = vector.broadcast %cst_34 : f32 to vector<128x1xf32>
      %c0_35 = arith.constant 0 : index
      %c0_36 = arith.constant 0 : index
      %47 = vector.load %arg11[%c0_35, %c0_36] : memref<128x1xf32, #tpu.memory_space<vmem>>, vector<128x1xf32>
      tpu.vector_store %arg11[%c0_35, %c0_36], %46 {strides = array<i32>} : memref<128x1xf32, #tpu.memory_space<vmem>>, vector<128x1xf32>,
    } else {
    }
    %c0 = arith.constant 0 : index
    %c0_1 = arith.constant 0 : index
    %3 = vector.load %arg2[%c0, %c0_1] : memref<128x128xf32, #tpu.memory_space<vmem>>, vector<128x128xf32>
    %c0_2 = arith.constant 0 : index
    %c0_3 = arith.constant 0 : index
    %4 = vector.load %arg3[%c0_2, %c0_3] : memref<128x128xf32, #tpu.memory_space<vmem>>, vector<128x128xf32>
    %cst = arith.constant dense<0.000000e+00> : vector<128x128xf32>
    %5 = tpu.matmul %3, %4, %cst {dimension_numbers = #tpu.dot_dimension_numbers<[1], [1], [0], [0], [0, 0, 1, 0], [], []>} : vector<128x128xf32>, vector<128x128xf32>, vector<128x128xf32> -> vector<128x128xf32>
    %c0_4 = arith.constant 0 : index
    %c0_5 = arith.constant 0 : index
    %6 = vector.load %arg4[%c0_4, %c0_5] : memref<128x1xf32, #tpu.memory_space<vmem>>, vector<128x1xf32>
    %c0_6 = arith.constant 0 : index
    %c0_7 = arith.constant 0 : index
    %7 = vector.load %arg5[%c0_6, %c0_7] : memref<1x128xf32, #tpu.memory_space<vmem>>, vector<1x128xf32>
    %8 = vector.broadcast %6 : vector<128x1xf32> to vector<128x128xf32>
    %9 = vector.broadcast %7 : vector<1x128xf32> to vector<128x128xf32>
    %10 = arith.addf %8, %9 : vector<128x128xf32>
    %cst_8 = arith.constant 2.000000e+00 : f32
    %11 = vector.broadcast %cst_8 : f32 to vector<128x128xf32>
    %12 = arith.mulf %11, %5 : vector<128x128xf32>
    %13 = arith.subf %10, %12 : vector<128x128xf32>
    %c0_9 = arith.constant 0 : index
    %c0_10 = arith.constant 0 : index
    %14 = vector.load %arg6[%c0_9, %c0_10] : memref<128x1xi32, #tpu.memory_space<vmem>>, vector<128x1xi32>
    %c0_11 = arith.constant 0 : index
    %c0_12 = arith.constant 0 : index
    %15 = vector.load %arg7[%c0_11, %c0_12] : memref<1x128xi32, #tpu.memory_space<vmem>>, vector<1x128xi32>
    %16 = vector.broadcast %14 : vector<128x1xi32> to vector<128x128xi32>
    %17 = vector.broadcast %15 : vector<1x128xi32> to vector<128x128xi32>
    %18 = arith.cmpi eq, %16, %17 : vector<128x128xi32>
    %c0_13 = arith.constant 0 : index
    %c0_14 = arith.constant 0 : index
    %19 = vector.load %arg8[%c0_13, %c0_14] : memref<1x128xf32, #tpu.memory_space<vmem>>, vector<1x128xf32>
    %cst_15 = arith.constant 5.000000e-01 : f32
    %20 = vector.broadcast %cst_15 : f32 to vector<1x128xf32>
    %21 = arith.cmpf ogt, %19, %20 : vector<1x128xf32>
    %22 = vector.broadcast %21 : vector<1x128xi1> to vector<128x128xi1>
    %23 = arith.andi %18, %22 : vector<128x128xi1>
    %cst_16 = arith.constant dense<true> : vector<128x128xi1>
    %24 = arith.xori %18, %cst_16 : vector<128x128xi1>
    %25 = vector.broadcast %21 : vector<1x128xi1> to vector<128x128xi1>
    %26 = arith.andi %24, %25 : vector<128x128xi1>
    %cst_17 = arith.constant 0xFF800000 : f32
    %27 = vector.broadcast %cst_17 : f32 to vector<128x128xf32>
    %28 = arith.select %23, %13, %27 : vector<128x128xi1>, vector<128x128xf32>
    %cst_18 = arith.constant dense<0xFF800000> : vector<128xf32>
    %29 = vector.multi_reduction <maximumf>, %28, %cst_18 [1] : vector<128x128xf32> to vector<128xf32>
    %30 = vector.shape_cast %29 : vector<128xf32> to vector<128x1xf32>
    %cst_19 = arith.constant 0x7F800000 : f32
    %31 = vector.broadcast %cst_19 : f32 to vector<128x128xf32>
    %32 = arith.select %26, %13, %31 : vector<128x128xi1>, vector<128x128xf32>
    %cst_20 = arith.constant dense<0x7F800000> : vector<128xf32>
    %33 = vector.multi_reduction <minimumf>, %32, %cst_20 [1] : vector<128x128xf32> to vector<128xf32>
    %34 = vector.shape_cast %33 : vector<128xf32> to vector<128x1xf32>
    %c0_21 = arith.constant 0 : index
    %c0_22 = arith.constant 0 : index
    %35 = vector.load %arg10[%c0_21, %c0_22] : memref<128x1xf32, #tpu.memory_space<vmem>>, vector<128x1xf32>
    %36 = arith.maximumf %35, %30 : vector<128x1xf32>
    %c0_23 = arith.constant 0 : index
    %c0_24 = arith.constant 0 : index
    %37 = vector.load %arg10[%c0_23, %c0_24] : memref<128x1xf32, #tpu.memory_space<vmem>>, vector<128x1xf32>
    tpu.vector_store %arg10[%c0_23, %c0_24], %36 {strides = array<i32>} : memref<128x1xf32, #tpu.memory_space<vmem>>, vector<128x1xf32>,
    %c0_25 = arith.constant 0 : index
    %c0_26 = arith.constant 0 : index
    %38 = vector.load %arg11[%c0_25, %c0_26] : memref<128x1xf32, #tpu.memory_space<vmem>>, vector<128x1xf32>
    %39 = arith.minimumf %38, %34 : vector<128x1xf32>
    %c0_27 = arith.constant 0 : index
    %c0_28 = arith.constant 0 : index
    %40 = vector.load %arg11[%c0_27, %c0_28] : memref<128x1xf32, #tpu.memory_space<vmem>>, vector<128x1xf32>
    tpu.vector_store %arg11[%c0_27, %c0_28], %39 {strides = array<i32>} : memref<128x1xf32, #tpu.memory_space<vmem>>, vector<128x1xf32>,
    %c0_i32_29 = arith.constant 0 : i32
    %41 = arith.cmpi eq, %arg1, %c0_i32_29 : i32
    %42 = arith.extui %41 : i1 to i32
    %c0_i32_30 = arith.constant 0 : i32
    %43 = arith.cmpi ne, %42, %c0_i32_30 : i32
    scf.if %43 {
      %c0_31 = arith.constant 0 : index
      %c0_32 = arith.constant 0 : index
      %44 = vector.load %arg10[%c0_31, %c0_32] : memref<128x1xf32, #tpu.memory_space<vmem>>, vector<128x1xf32>
      %cst_33 = arith.constant 9.99999996E-13 : f32
      %45 = vector.broadcast %cst_33 : f32 to vector<128x1xf32>
      %46 = arith.maximumf %44, %45 : vector<128x1xf32>
      %47 = math.sqrt %46 : vector<128x1xf32>
      %c0_34 = arith.constant 0 : index
      %c0_35 = arith.constant 0 : index
      %48 = vector.load %arg11[%c0_34, %c0_35] : memref<128x1xf32, #tpu.memory_space<vmem>>, vector<128x1xf32>
      %cst_36 = arith.constant 9.99999996E-13 : f32
      %49 = vector.broadcast %cst_36 : f32 to vector<128x1xf32>
      %50 = arith.maximumf %48, %49 : vector<128x1xf32>
      %51 = math.sqrt %50 : vector<128x1xf32>
      %52 = arith.subf %47, %51 : vector<128x1xf32>
      %cst_37 = arith.constant 3.000000e-01 : f32
      %53 = vector.broadcast %cst_37 : f32 to vector<128x1xf32>
      %54 = arith.addf %52, %53 : vector<128x1xf32>
      %cst_38 = arith.constant 0.000000e+00 : f32
      %55 = vector.broadcast %cst_38 : f32 to vector<128x1xf32>
      %56 = arith.maximumf %54, %55 : vector<128x1xf32>
      %c0_39 = arith.constant 0 : index
      %c0_40 = arith.constant 0 : index
      %57 = vector.load %arg9[%c0_39, %c0_40] : memref<128x1xf32, #tpu.memory_space<vmem>>, vector<128x1xf32>
      tpu.vector_store %arg9[%c0_39, %c0_40], %56 {strides = array<i32>} : memref<128x1xf32, #tpu.memory_space<vmem>>, vector<128x1xf32>,
    } else {
    }
    return
  }
  func.func @transform_0(%arg0: i32, %arg1: i32) -> (i32, i32) {
    %c0_i32 = arith.constant 0 : i32
    %c0_i32_0 = arith.constant 0 : i32
    return %arg0, %c0_i32 : i32, i32
  }
  func.func @transform_1(%arg0: i32, %arg1: i32) -> (i32, i32) {
    %c0_i32 = arith.constant 0 : i32
    %c0_i32_0 = arith.constant 0 : i32
    return %arg1, %c0_i32 : i32, i32
  }
  func.func @transform_2(%arg0: i32, %arg1: i32) -> (i32, i32) {
    %c0_i32 = arith.constant 0 : i32
    %c0_i32_0 = arith.constant 0 : i32
    return %arg0, %c0_i32 : i32, i32
  }
  func.func @transform_3(%arg0: i32, %arg1: i32) -> (i32, i32) {
    %c0_i32 = arith.constant 0 : i32
    %c0_i32_0 = arith.constant 0 : i32
    return %c0_i32, %arg1 : i32, i32
  }
  func.func @transform_4(%arg0: i32, %arg1: i32) -> (i32, i32) {
    %c0_i32 = arith.constant 0 : i32
    %c0_i32_0 = arith.constant 0 : i32
    return %arg0, %c0_i32 : i32, i32
  }
  func.func @transform_5(%arg0: i32, %arg1: i32) -> (i32, i32) {
    %c0_i32 = arith.constant 0 : i32
    %c0_i32_0 = arith.constant 0 : i32
    return %c0_i32, %arg1 : i32, i32
  }
  func.func @transform_6(%arg0: i32, %arg1: i32) -> (i32, i32) {
    %c0_i32 = arith.constant 0 : i32
    %c0_i32_0 = arith.constant 0 : i32
    return %c0_i32, %arg1 : i32, i32
  }
  func.func @transform_7(%arg0: i32, %arg1: i32) -> (i32, i32) {
    %c0_i32 = arith.constant 0 : i32
    %c0_i32_0 = arith.constant 0 : i32
    return %arg0, %c0_i32 : i32, i32
  }
}

</mosaic_0001>

<bundles_post_ra>
// kernel: tpu_custom_call.1
= control target key start
LH: loop header
LB: loop body
LE: loop exit
PB: predicated region body
PF: predicated region fallthrough
CT: control target
= control target key end

     0   :  { %v1276_v0 = vmov 0   ;;  %vm1277_vm3 = vmmov 1   ;;  %s2427_s2 = inlined_call_operand.vmem [shape: f32[128,1], index: 2, kind: input, shape index: {}]   ;;  %s2428_s1 = inlined_call_operand.vmem [shape: f32[128,128], index: 1, kind: input, shape index: {}]   ;;  %s2429_s3 = inlined_call_operand.vmem [shape: f32[1,128], index: 3, kind: input, shape index: {}]   ;;  %s2430_s5 = inlined_call_operand.vmem [shape: s32[1,128], index: 5, kind: input, shape index: {}]   ;;  %s2431_s4 = inlined_call_operand.vmem [shape: s32[128,1], index: 4, kind: input, shape index: {}]   ;;  %s2432_s0 = inlined_call_operand.vmem [shape: f32[128,128], index: 0, kind: input, shape index: {}]   ;;  %s2433_s6 = inlined_call_operand.vmem [shape: f32[1,128], index: 6, kind: input, shape index: {}]   ;;  %s2434_s7 = inlined_call_operand.vmem [shape: f32[128,1], index: 7, kind: output, shape index: {}]  }
   0x1   :  { %1209 = vset.pattern.permute.xlu2 %v1276_v0  ;;  %1208 = vset.pattern.permute.xlu1 %v1276_v0  ;;  %v164_v1 = vld [vmem:[%s2427_s2 + $0x20] sm:$0xff]  ;;  %v162_v2 = vld [vmem:[%s2427_s2 + $0x10] sm:$0xff]  ;;  %v94_v4 = vld [vmem:[%s2428_s1 + $0x78] sm:$0xff] }
   0x2   :  { %1207 = vset.pattern.permute.xlu0 %v1276_v0  ;;  %199 = vperm.xlu2 %1209, %v164_v1   ;;  %v160_v3 = vld [vmem:[%s2427_s2] sm:$0xff]  ;;  %v93_v5 = vld [vmem:[%s2428_s1 + $0x70] sm:$0xff]  ;;  %v165_v6 = vld [vmem:[%s2427_s2 + $0x28] sm:$0xff] }
   0x3   :  { %189 = vperm.xlu1 %1208, %v162_v2   ;;  %179 = vperm.xlu0 %1207, %v160_v3   ;;  %v163_v7 = vld [vmem:[%s2427_s2 + $0x18] sm:$0xff]  ;;  %v161_v8 = vld [vmem:[%s2427_s2 + $0x8] sm:$0xff]  ;;  %v91_v10 = vld [vmem:[%s2428_s1 + $0x60] sm:$0xff] }
   0x4   :  { %95 = vmatpush.xpose.msra.mxu0 %v94_v4  ;;  %1155 = vmatpush.xpose.msra.mxu1 %v94_v4  ;;  %v92_v9 = vld [vmem:[%s2428_s1 + $0x68] sm:$0xff]  ;;  %v168_v11 = vld [vmem:[%s2427_s2 + $0x40] sm:$0xff]  ;;  %v167_v12 = vld [vmem:[%s2427_s2 + $0x38] sm:$0xff] }
   0x5   :  { %1156 = vmatpush.xpose.msra.mxu2 %v94_v4  ;;  %1157 = vmatpush.xpose.msra.mxu3 %v94_v4  ;;  %v166_v13 = vld [vmem:[%s2427_s2 + $0x30] sm:$0xff]  ;;  %v90_v14 = vld [vmem:[%s2428_s1 + $0x58] sm:$0xff]  ;;  %v169_v18 = vld [vmem:[%s2427_s2 + $0x48] sm:$0xff] }
   0x6   :  { %v89_v15 = vld [vmem:[%s2428_s1 + $0x50] sm:$0xff]  ;;  %v171_v16 = vld [vmem:[%s2427_s2 + $0x58] sm:$0xff]  ;;  %v88_v19 = vld [vmem:[%s2428_s1 + $0x48] sm:$0xff] }
   0x7   :  { %v170_v17 = vld [vmem:[%s2427_s2 + $0x50] sm:$0xff]  ;;  %v87_v20 = vld [vmem:[%s2428_s1 + $0x40] sm:$0xff]  ;;  %v173_v22 = vld [vmem:[%s2427_s2 + $0x68] sm:$0xff] }
   0x8   :  { %96 = vmatpush.xpose.msra.mxu0 %v93_v5  ;;  %1158 = vmatpush.xpose.msra.mxu1 %v93_v5  ;;  %v174_v21 = vld [vmem:[%s2427_s2 + $0x70] sm:$0xff]  ;;  %v172_v23 = vld [vmem:[%s2427_s2 + $0x60] sm:$0xff]  ;;  %v86_v24 = vld [vmem:[%s2428_s1 + $0x38] sm:$0xff] }
   0x9   :  { %1159 = vmatpush.xpose.msra.mxu2 %v93_v5  ;;  %1160 = vmatpush.xpose.msra.mxu3 %v93_v5  ;;  %v85_v25 = vld [vmem:[%s2428_s1 + $0x30] sm:$0xff]  ;;  %v309_v26 = vld [vmem:[%s2431_s4 + $0x8] sm:$0xff]  ;;  %v308_v27 = vld [vmem:[%s2431_s4] sm:$0xff] }
   0xa   :  { %204 = vperm.xlu2 %1209, %v165_v6   ;;  %v175_v28 = vld [vmem:[%s2427_s2 + $0x78] sm:$0xff]  ;;  %v84_v29 = vld [vmem:[%s2428_s1 + $0x28] sm:$0xff]  ;;  %v83_v30 = vld [vmem:[%s2428_s1 + $0x20] sm:$0xff] }
   0xb   :  { %194 = vperm.xlu1 %1208, %v163_v7   ;;  %184 = vperm.xlu0 %1207, %v161_v8   ;;  %v312_v31 = vld [vmem:[%s2431_s4 + $0x20] sm:$0xff]  ;;  %v311_v32 = vld [vmem:[%s2431_s4 + $0x18] sm:$0xff]  ;;  %v310_v33 = vld [vmem:[%s2431_s4 + $0x10] sm:$0xff] }
   0xc   :  { %97 = vmatpush.xpose.msra.mxu0 %v92_v9  ;;  %1161 = vmatpush.xpose.msra.mxu1 %v92_v9  ;;  %v82_v34 = vld [vmem:[%s2428_s1 + $0x18] sm:$0xff]  ;;  %v81_v35 = vld [vmem:[%s2428_s1 + $0x10] sm:$0xff]  ;;  %v313_v38 = vld [vmem:[%s2431_s4 + $0x28] sm:$0xff] }
   0xd   :  { %1162 = vmatpush.xpose.msra.mxu2 %v92_v9  ;;  %1163 = vmatpush.xpose.msra.mxu3 %v92_v9  ;;  %v315_v36 = vld [vmem:[%s2431_s4 + $0x38] sm:$0xff]  ;;  %v314_v37 = vld [vmem:[%s2431_s4 + $0x30] sm:$0xff]  ;;  %v80_v39 = vld [vmem:[%s2428_s1 + $0x8] sm:$0xff] }
   0xe   :  { %v79_v40 = vld [vmem:[%s2428_s1] sm:$0xff]  ;;  %v318_v41 = vld [vmem:[%s2431_s4 + $0x50] sm:$0xff]  ;;  %v317_v46 = vld [vmem:[%s2431_s4 + $0x48] sm:$0xff] }
   0xf   :  { %v63_v42 = vld [vmem:[%s2432_s0] sm:$0xff]  ;;  %v321_v48 = vld [vmem:[%s2431_s4 + $0x68] sm:$0xff]  ;;  %v319_v54 = vld [vmem:[%s2431_s4 + $0x58] sm:$0xff] }
  0x10   :  { %98 = vmatpush.xpose.msra.mxu0 %v91_v10  ;;  %1164 = vmatpush.xpose.msra.mxu1 %v91_v10  ;;  %v67_v43 = vld [vmem:[%s2432_s0 + $0x20] sm:$0xff]  ;;  %v64_v49 = vld [vmem:[%s2432_s0 + $0x8] sm:$0xff]  ;;  %v65_v55 = vld [vmem:[%s2432_s0 + $0x10] sm:$0xff] }
  0x11   :  { %1165 = vmatpush.xpose.msra.mxu2 %v91_v10  ;;  %1166 = vmatpush.xpose.msra.mxu3 %v91_v10  ;;  %v71_v44 = vld [vmem:[%s2432_s0 + $0x40] sm:$0xff]  ;;  %v68_v50 = vld [vmem:[%s2432_s0 + $0x28] sm:$0xff]  ;;  %v69_v56 = vld [vmem:[%s2432_s0 + $0x30] sm:$0xff] }
  0x12   :  { %219 = vperm.xlu2 %1209, %v168_v11   ;;  %v75_v45 = vld [vmem:[%s2432_s0 + $0x60] sm:$0xff]  ;;  %v72_v51 = vld [vmem:[%s2432_s0 + $0x48] sm:$0xff]  ;;  %v73_v57 = vld [vmem:[%s2432_s0 + $0x50] sm:$0xff] }
  0x13   :  { %214 = vperm.xlu1 %1208, %v167_v12   ;;  %209 = vperm.xlu0 %1207, %v166_v13   ;;  %v316_v47 = vld [vmem:[%s2431_s4 + $0x40] sm:$0xff]  ;;  %v76_v52 = vld [vmem:[%s2432_s0 + $0x68] sm:$0xff]  ;;  %v77_v58 = vld [vmem:[%s2432_s0 + $0x70] sm:$0xff] }
  0x14   :  { %99 = vmatpush.xpose.msra.mxu0 %v90_v14  ;;  %1167 = vmatpush.xpose.msra.mxu1 %v90_v14  ;;  %v320_v53 = vld [vmem:[%s2431_s4 + $0x60] sm:$0xff]  ;;  %v323_v59 = vld [vmem:[%s2431_s4 + $0x78] sm:$0xff]  ;;  %v322_v60 = vld [vmem:[%s2431_s4 + $0x70] sm:$0xff] }
  0x15   :  { %1168 = vmatpush.xpose.msra.mxu2 %v90_v14  ;;  %1169 = vmatpush.xpose.msra.mxu3 %v90_v14  ;;  %v66_v61 = vld [vmem:[%s2432_s0 + $0x18] sm:$0xff] }
  0x16   :  { %v70_v62 = vld [vmem:[%s2432_s0 + $0x38] sm:$0xff] }
  0x17   :  { %v74_v63 = vld [vmem:[%s2432_s0 + $0x58] sm:$0xff] }
  0x18   :  { %100 = vmatpush.xpose.msra.mxu0 %v89_v15  ;;  %1170 = vmatpush.xpose.msra.mxu1 %v89_v15  ;;  %v78_v1 = vld [vmem:[%s2432_s0 + $0x78] sm:$0xff] }
  0x19   :  { %1171 = vmatpush.xpose.msra.mxu2 %v89_v15  ;;  %1172 = vmatpush.xpose.msra.mxu3 %v89_v15 }
  0x1a   :  { %234 = vperm.xlu2 %1209, %v171_v16  }
  0x1b   :  { %229 = vperm.xlu1 %1208, %v170_v17   ;;  %224 = vperm.xlu0 %1207, %v169_v18  }
  0x1c   :  { %101 = vmatpush.xpose.msra.mxu0 %v88_v19  ;;  %1173 = vmatpush.xpose.msra.mxu1 %v88_v19 }
  0x1d   :  { %1174 = vmatpush.xpose.msra.mxu2 %v88_v19  ;;  %1175 = vmatpush.xpose.msra.mxu3 %v88_v19 }
  0x20   :  { %102 = vmatpush.xpose.msra.mxu0 %v87_v20  ;;  %1176 = vmatpush.xpose.msra.mxu1 %v87_v20 }
  0x21   :  { %1177 = vmatpush.xpose.msra.mxu2 %v87_v20  ;;  %1178 = vmatpush.xpose.msra.mxu3 %v87_v20 }
  0x22   :  { %249 = vperm.xlu2 %1209, %v174_v21  }
  0x23   :  { %244 = vperm.xlu1 %1208, %v173_v22   ;;  %239 = vperm.xlu0 %1207, %v172_v23   ;;  %v390_v23 = vld [vmem:[%s2433_s6] sm:$0x1] }
  0x24   :  { %103 = vmatpush.xpose.msra.mxu0 %v86_v24  ;;  %1179 = vmatpush.xpose.msra.mxu1 %v86_v24  ;;  %vm391_vm0 = vcmp.gt.f32.partialorder %v390_v23, 0.5 }
  0x25   :  { %1180 = vmatpush.xpose.msra.mxu2 %v86_v24  ;;  %1181 = vmatpush.xpose.msra.mxu3 %v86_v24  ;;  %v392_v24 = vsel %vm391_vm0, 1, %v1276_v0 }
  0x28   :  { %104 = vmatpush.xpose.msra.mxu0 %v85_v25  ;;  %1182 = vmatpush.xpose.msra.mxu1 %v85_v25 }
  0x29   :  { %1183 = vmatpush.xpose.msra.mxu2 %v85_v25  ;;  %1184 = vmatpush.xpose.msra.mxu3 %v85_v25  ;;  %v1556_v25 = vld [vmem:[%s2430_s5] ss:$0 sm:$0xff] }
  0x2a   :  { %329 = vperm.xlu2 %1209, %v309_v26  }
  0x2b   :  { %326 = vperm.xlu1 %1208, %v308_v27   ;;  %254 = vperm.xlu0 %1207, %v175_v28   ;;  %v393_v27 = vperm.slane %v392_v24, 0 }
  0x2c   :  { %105 = vmatpush.xpose.msra.mxu0 %v84_v29  ;;  %1185 = vmatpush.xpose.msra.mxu1 %v84_v29 }
  0x2d   :  { %1186 = vmatpush.xpose.msra.mxu2 %v84_v29  ;;  %1187 = vmatpush.xpose.msra.mxu3 %v84_v29  ;;  %vm1568_vm2 = vcmp.eq.s32.totalorder %v393_v27, 1 }
  0x30   :  { %106 = vmatpush.xpose.msra.mxu0 %v83_v30  ;;  %1188 = vmatpush.xpose.msra.mxu1 %v83_v30 }
  0x31   :  { %1189 = vmatpush.xpose.msra.mxu2 %v83_v30  ;;  %1190 = vmatpush.xpose.msra.mxu3 %v83_v30  ;;  %v1566_v30 = vld [vmem:[%s2429_s3] ss:$0 sm:$0xff] }
  0x32   :  { %338 = vperm.xlu2 %1209, %v312_v31  }
  0x33   :  { %335 = vperm.xlu1 %1208, %v311_v32   ;;  %332 = vperm.xlu0 %1207, %v310_v33  }
  0x34   :  { %107 = vmatpush.xpose.msra.mxu0 %v82_v34  ;;  %1191 = vmatpush.xpose.msra.mxu1 %v82_v34 }
  0x35   :  { %1192 = vmatpush.xpose.msra.mxu2 %v82_v34  ;;  %1193 = vmatpush.xpose.msra.mxu3 %v82_v34 }
  0x38   :  { %108 = vmatpush.xpose.msra.mxu0 %v81_v35  ;;  %1194 = vmatpush.xpose.msra.mxu1 %v81_v35 }
  0x39   :  { %1195 = vmatpush.xpose.msra.mxu2 %v81_v35  ;;  %1196 = vmatpush.xpose.msra.mxu3 %v81_v35 }
  0x3a   :  { %347 = vperm.xlu2 %1209, %v315_v36  }
  0x3b   :  { %344 = vperm.xlu1 %1208, %v314_v37   ;;  %341 = vperm.xlu0 %1207, %v313_v38  }
  0x3c   :  { %109 = vmatpush.xpose.msra.mxu0 %v80_v39  ;;  %1197 = vmatpush.xpose.msra.mxu1 %v80_v39 }
  0x3d   :  { %1198 = vmatpush.xpose.msra.mxu2 %v80_v39  ;;  %1199 = vmatpush.xpose.msra.mxu3 %v80_v39 }
  0x40   :  { %110 = vmatpush.xpose.msra.mxu0 %v79_v40  ;;  %1200 = vmatpush.xpose.msra.mxu1 %v79_v40 }
  0x41   :  { %1201 = vmatpush.xpose.msra.mxu2 %v79_v40  ;;  %1202 = vmatpush.xpose.msra.mxu3 %v79_v40 }
  0x42   :  { %356 = vperm.xlu2 %1209, %v318_v41  }
  0x43   :  { %111 = vmatmul.f32.vlgmr.msra.gmra.mxu0 %v63_v42  ;;  %123 = vmatmul.f32.vlgmr.msra.gmra.mxu1 %v67_v43 }
  0x44   :  { %135 = vmatmul.f32.vlgmr.msra.gmra.mxu2 %v71_v44  ;;  %147 = vmatmul.f32.vlgmr.msra.gmra.mxu3 %v75_v45 }
  0x45   :  { %353 = vperm.xlu1 %1208, %v317_v46   ;;  %350 = vperm.xlu0 %1207, %v316_v47  }
  0x4a   :  { %365 = vperm.xlu2 %1209, %v321_v48  }
  0x4b   :  { %114 = vmatmul.f32.gmra.mxu0 %v64_v49  ;;  %126 = vmatmul.f32.gmra.mxu1 %v68_v50 }
  0x4c   :  { %138 = vmatmul.f32.gmra.mxu2 %v72_v51  ;;  %150 = vmatmul.f32.gmra.mxu3 %v76_v52 }
  0x4d   :  { %362 = vperm.xlu1 %1208, %v320_v53   ;;  %359 = vperm.xlu0 %1207, %v319_v54  }
  0x53   :  { %117 = vmatmul.f32.gmra.mxu0 %v65_v55  ;;  %129 = vmatmul.f32.gmra.mxu1 %v69_v56 }
  0x54   :  { %141 = vmatmul.f32.gmra.mxu2 %v73_v57  ;;  %153 = vmatmul.f32.gmra.mxu3 %v77_v58 }
  0x55   :  { %371 = vperm.xlu1 %1208, %v323_v59   ;;  %368 = vperm.xlu0 %1207, %v322_v60  }
  0x5b   :  { %120 = vmatmul.f32.gmra.mxu0 %v66_v61  ;;  %132 = vmatmul.f32.gmra.mxu1 %v70_v62 }
  0x5c   :  { %144 = vmatmul.f32.gmra.mxu2 %v74_v63  ;;  %156 = vmatmul.f32.gmra.mxu3 %v78_v1  ;;  %v200_v6 = vpop.permute.xlu2 %199 }
  0x5d   :  { %v264_v31 = vadd.f32 %v1566_v30, %v200_v6 }
  0x64   :  { %v1525_v9 = vpop.permute.xlu2 %204 }
  0x65   :  { %v265_v6 = vadd.f32 %v1566_v30, %v1525_v9 }
  0x6c   :  { %v220_v12 = vpop.permute.xlu2 %219 }
  0x6d   :  { %v268_v43 = vadd.f32 %v1566_v30, %v220_v12 }
  0x74   :  { %v1533_v15 = vpop.permute.xlu2 %234 }
  0x75   :  { %v1515_v2 = vpop.permute.xlu1 %189  ;;  %v180_v3 = vpop.permute.xlu0 %179 }
  0x76   :  { %v260_v34 = vadd.f32 %v1566_v30, %v180_v3 }
  0x7c   :  { %v1539_v18 = vpop.permute.xlu2 %249 }
  0x7d   :  { %v1517_v4 = vpop.permute.xlu1 %194  ;;  %v1519_v5 = vpop.permute.xlu0 %184 }
  0x7e   :  { %v261_v57 = vadd.f32 %v1566_v30, %v1519_v5  ;;  %v263_v9 = vadd.f32 %v1566_v30, %v1517_v4 }
  0x84   :  { %v1545_v21 = vpop.permute.xlu2 %329 }
  0x85   :  { %v1521_v7 = vpop.permute.xlu1 %214  ;;  %v1523_v8 = vpop.permute.xlu0 %209  ;;  %vm375_vm13 = vcmp.eq.s32.totalorder %v1545_v21, %v1556_v25 }
  0x8c   :  { %v339_v28 = vpop.permute.xlu2 %338 }
  0x8d   :  { %v1527_v10 = vpop.permute.xlu1 %229  ;;  %v1529_v11 = vpop.permute.xlu0 %224  ;;  %vm378_vm1 = vcmp.eq.s32.totalorder %v339_v28, %v1556_v25 }
  0x8e   :  { %vm415_vm4 = vmxor %vm378_vm1, %vm1277_vm3 }
  0x8f   :  { %vm431_vm6 = vmand %vm415_vm4, %vm1568_vm2 }
  0x90   :  { %vm399_vm12 = vmand %vm378_vm1, %vm1568_vm2 }
  0x91   :  { %vm396_vm1 = vmand %vm375_vm13, %vm1568_vm2 }
  0x94   :  { %v1590_v50 = vpop.permute.xlu2 %347 }
  0x95   :  { %v1531_v13 = vpop.permute.xlu1 %244  ;;  %v240_v14 = vpop.permute.xlu0 %239 }
  0x96   :  { %v272_v46 = vadd.f32 %v1566_v30, %v240_v14 }
  0x9c   :  { %v1624_v61 = vpop.permute.xlu2 %356 }
  0x9d   :  { %v1535_v16 = vpop.permute.xlu1 %326  ;;  %v1537_v17 = vpop.permute.xlu0 %254 }
  0x9e   :  { %vm374_vm5 = vcmp.eq.s32.totalorder %v1535_v16, %v1556_v25 }
  0x9f   :  { %vm395_vm7 = vmand %vm374_vm5, %vm1568_vm2 }
  0xa0   :  { %vm411_vm15 = vmxor %vm374_vm5, %vm1277_vm3 }
  0xa1   :  { %vm427_vm5 = vmand %vm411_vm15, %vm1568_vm2 }
  0xa5   :  { %v1541_v19 = vpop.permute.xlu1 %335  ;;  %v1543_v20 = vpop.permute.xlu0 %332 }
  0xa6   :  { %vm377_vm0 = vcmp.eq.s32.totalorder %v1541_v19, %v1556_v25 }
  0xad   :  { %v1547_v22 = vpop.permute.xlu1 %344  ;;  %v1558_v26 = vpop.permute.xlu0 %341 }
  0xb7   :  { %v1560_v29 = vpop.permute.xlu1 %353  ;;  %v351_v39 = vpop.permute.xlu0 %350 }
  0xb8   :  { %vm382_vm8 = vcmp.eq.s32.totalorder %v351_v39, %v1556_v25 }
  0xb9   :  { %vm403_vm10 = vmand %vm382_vm8, %vm1568_vm2 }
  0xba   :  { %vm419_vm14 = vmxor %vm382_vm8, %vm1277_vm3 }
  0xbb   :  { %vm435_vm4 = vmand %vm419_vm14, %vm1568_vm2 }
  0xbc   :  { %vm1645_vm8 = vmand %vm377_vm0, %vm1568_vm2 }
  0xbf   :  { %v363_v42 = vpop.permute.xlu1 %362  ;;  %v1664_v27 = vpop.permute.xlu0 %359 }
  0xc0   :  { %v112_v32 = vpop.f32.mrf.mxu0  ;;  %v124_v33 = vpop.f32.mrf.mxu1  ;;  %vm386_vm9 = vcmp.eq.s32.totalorder %v363_v42, %v1556_v25 }
  0xc1   :  { %v276_v35 = vmul.f32 2.0, %v112_v32  ;;  %v280_v36 = vmul.f32 2.0, %v124_v33  ;;  %vm407_vm11 = vmand %vm386_vm9, %vm1568_vm2 }
  0xc3   :  { %v296_v37 = vsub.f32 %v264_v31, %v280_v36  ;;  %v292_v38 = vsub.f32 %v260_v34, %v276_v35  ;;  %v269_v36 = vadd.f32 %v1566_v30, %v1529_v11 }
  0xc5   :  { %v495_v40 = vsel %vm431_vm6, %v296_v37, inf  ;;  %v443_v41 = vsel %vm395_vm7, %v292_v38, -inf  ;;  %v447_v56 = vsel %vm399_vm12, %v296_v37, -inf  ;;  %vm379_vm6 = vcmp.eq.s32.totalorder %v1558_v26, %v1556_v25  ;;  %vm1634_vm7 = vmxor %vm377_vm0, %vm1277_vm3  ;;  %v1688_v37 = vpop.permute.xlu2 %365 }
  0xc6   :  { %515 = vmin.xlane.f32.xlu0 %v495_v40  ;;  %459 = vmax.xlane.f32.xlu2 %v443_v41  ;;  %v491_v5 = vsel %vm427_vm5, %v292_v38, inf  ;;  %vm423_vm12 = vmxor %vm386_vm9, %vm1277_vm3  ;;  %v273_v38 = vadd.f32 %v1566_v30, %v1531_v13 }
  0xc7   :  { %v136_v44 = vpop.f32.mrf.mxu2  ;;  %v148_v45 = vpop.f32.mrf.mxu3  ;;  %vm400_vm15 = vmand %vm379_vm6, %vm1568_vm2 }
  0xc8   :  { %v284_v47 = vmul.f32 2.0, %v136_v44  ;;  %v288_v48 = vmul.f32 2.0, %v148_v45  ;;  %v115_v49 = vpop.f32.mrf.mxu0  ;;  %v127_v60 = vpop.f32.mrf.mxu1  ;;  %vm439_vm9 = vmand %vm423_vm12, %vm1568_vm2  ;;  %v262_v45 = vadd.f32 %v1566_v30, %v1515_v2 }
  0xc9   :  { %v277_v53 = vmul.f32 2.0, %v115_v49  ;;  %v281_v62 = vmul.f32 2.0, %v127_v60  ;;  %vm412_vm0 = vmxor %vm375_vm13, %vm1277_vm3  ;;  %v267_v60 = vadd.f32 %v1566_v30, %v1521_v7 }
  0xca   :  { %v304_v51 = vsub.f32 %v272_v46, %v288_v48  ;;  %v300_v52 = vsub.f32 %v268_v43, %v284_v47  ;;  %v1714_v43 = vpop.permute.xlu0 %368  ;;  %v274_v46 = vadd.f32 %v1566_v30, %v1539_v18 }
  0xcb   :  { %v293_v59 = vsub.f32 %v261_v57, %v277_v53  ;;  %v297_v23 = vsub.f32 %v265_v6, %v281_v62  ;;  %v372_v6 = vpop.permute.xlu1 %371 }
  0xcc   :  { %v455_v54 = vsel %vm407_vm11, %v304_v51, -inf  ;;  %v451_v55 = vsel %vm403_vm10, %v300_v52, -inf  ;;  %v499_v63 = vsel %vm435_vm4, %v300_v52, inf  ;;  %vm416_vm10 = vmxor %vm379_vm6, %vm1277_vm3  ;;  %v503_v34 = vsel %vm439_vm9, %v304_v51, inf }
  0xcd   :  { %483 = vmax.xlane.f32.xlu1 %v455_v54  ;;  %v444_v1 = vsel %vm396_vm1, %v293_v59, -inf  ;;  %vm430_vm11 = vmand %vm1634_vm7, %vm1568_vm2  ;;  %v448_v32 = vsel %vm400_vm15, %v297_v23, -inf  ;;  %vm383_vm1 = vcmp.eq.s32.totalorder %v1560_v29, %v1556_v25  ;;  %vm387_vm4 = vcmp.eq.s32.totalorder %v1688_v37, %v1556_v25 }
  0xce   :  { %475 = vmax.xlane.f32.xlu0 %v451_v55  ;;  %467 = vmax.xlane.f32.xlu2 %v447_v56  ;;  %vm432_vm14 = vmand %vm416_vm10, %vm1568_vm2  ;;  %vm376_vm7 = vcmp.eq.s32.totalorder %v1543_v20, %v1556_v25  ;;  %vm388_vm10 = vcmp.eq.s32.totalorder %v1714_v43, %v1556_v25  ;;  %v266_v54 = vadd.f32 %v1566_v30, %v1523_v8 }
  0xcf   :  { %v151_v14 = vpop.f32.mrf.mxu3  ;;  %v139_v19 = vpop.f32.mrf.mxu2  ;;  %v496_v31 = vsel %vm432_vm14, %v297_v23, inf  ;;  %vm428_vm6 = vmand %vm412_vm0, %vm1568_vm2  ;;  %vm384_vm14 = vcmp.eq.s32.totalorder %v1624_v61, %v1556_v25  ;;  %v270_v55 = vadd.f32 %v1566_v30, %v1527_v10  ;;  %vm380_vm0 = vcmp.eq.s32.totalorder %v1547_v22, %v1556_v25 }
  0xd0   :  { %v118_v58 = vpop.f32.mrf.mxu0  ;;  %v285_v4 = vmul.f32 2.0, %v139_v19  ;;  %v289_v33 = vmul.f32 2.0, %v151_v14  ;;  %vm404_vm13 = vmand %vm383_vm1, %vm1568_vm2  ;;  %v492_v42 = vsel %vm428_vm6, %v293_v59, inf  ;;  %v130_v47 = vpop.f32.mrf.mxu1  ;;  %v275_v23 = vadd.f32 %v1566_v30, %v1537_v17 }
  0xd1   :  { %v278_v13 = vmul.f32 2.0, %v118_v58  ;;  %vm408_vm5 = vmand %vm387_vm4, %vm1568_vm2  ;;  %v282_v18 = vmul.f32 2.0, %v130_v47 }
  0xd2   :  { %v301_v39 = vsub.f32 %v269_v36, %v285_v4  ;;  %v1700_v11 = vsub.f32 %v273_v38, %v289_v33  ;;  %vm397_vm12 = vmand %vm376_vm7, %vm1568_vm2 }
  0xd3   :  { %v294_v48 = vsub.f32 %v262_v45, %v278_v13  ;;  %vm409_vm15 = vmand %vm388_vm10, %vm1568_vm2  ;;  %v298_v56 = vsub.f32 %v266_v54, %v282_v18 }
  0xd4   :  { %v452_v41 = vsel %vm404_vm13, %v301_v39, -inf  ;;  %v456_v44 = vsel %vm408_vm5, %v1700_v11, -inf  ;;  %vm417_vm6 = vmxor %vm380_vm0, %vm1277_vm3 }
  0xd5   :  { %523 = vmin.xlane.f32.xlu1 %v499_v63  ;;  %v445_v29 = vsel %vm397_vm12, %v294_v48, -inf  ;;  %vm401_vm5 = vmand %vm380_vm0, %vm1568_vm2 }
  0xd6   :  { %461 = vmax.xlane.f32.xlu0 %v444_v1  ;;  %507 = vmin.xlane.f32.xlu2 %v491_v5  ;;  %v449_v10 = vsel %vm401_vm5, %v298_v56, -inf  ;;  %vm433_vm12 = vmand %vm417_vm6, %vm1568_vm2 }
  0xd7   :  { %v154_v40 = vpop.f32.mrf.mxu3  ;;  %v142_v2 = vpop.f32.mrf.mxu2  ;;  %v497_v59 = vsel %vm433_vm12, %v298_v56, inf  ;;  %vm405_vm6 = vmand %vm384_vm14, %vm1568_vm2 }
  0xd8   :  { %v121_v16 = vpop.f32.mrf.mxu0  ;;  %v290_v21 = vmul.f32 2.0, %v154_v40  ;;  %v286_v51 = vmul.f32 2.0, %v142_v2  ;;  %v133_v58 = vpop.f32.mrf.mxu1 }
  0xd9   :  { %v279_v24 = vmul.f32 2.0, %v121_v16  ;;  %v283_v8 = vmul.f32 2.0, %v133_v58  ;;  %v271_v16 = vadd.f32 %v1566_v30, %v1533_v15 }
  0xda   :  { %v1725_v49 = vsub.f32 %v274_v46, %v290_v21  ;;  %v302_v57 = vsub.f32 %v270_v55, %v286_v51 }
  0xdb   :  { %v1666_v28 = vsub.f32 %v263_v9, %v279_v24  ;;  %v299_v62 = vsub.f32 %v267_v60, %v283_v8  ;;  %v1278_v9 = vmov inf  }
  0xdc   :  { %v457_v52 = vsel %vm409_vm15, %v1725_v49, -inf  ;;  %v453_v14 = vsel %vm405_vm6, %v302_v57, -inf }
  0xdd   :  { %517 = vmin.xlane.f32.xlu1 %v496_v31  ;;  %v446_v35 = vsel %vm1645_vm8, %v1666_v28, -inf  ;;  %v1684_v26 = vsel %vm430_vm11, %v1666_v28, inf  ;;  %vm420_vm11 = vmxor %vm383_vm1, %vm1277_vm3 }
  0xde   :  { %469 = vmax.xlane.f32.xlu0 %v448_v32  ;;  %531 = vmin.xlane.f32.xlu2 %v503_v34  ;;  %vm436_vm9 = vmand %vm420_vm11, %vm1568_vm2  ;;  %vm381_vm11 = vcmp.eq.s32.totalorder %v1590_v50, %v1556_v25 }
  0xdf   :  { %v500_v53 = vsel %vm436_vm9, %v301_v39, inf  ;;  %vm421_vm1 = vmxor %vm384_vm14, %vm1277_vm3  ;;  %v145_v63 = vpop.f32.mrf.mxu2  ;;  %v157_v1 = vpop.f32.mrf.mxu3  ;;  %vm389_vm14 = vcmp.eq.s32.totalorder %v372_v6, %v1556_v25 }
  0xe0   :  { %vm437_vm13 = vmand %vm421_vm1, %vm1568_vm2  ;;  %v287_v7 = vmul.f32 2.0, %v145_v63  ;;  %v291_v3 = vmul.f32 2.0, %v157_v1 }
  0xe1   :  { %v501_v22 = vsel %vm437_vm13, %v302_v57, inf  ;;  %vm418_vm15 = vmxor %vm381_vm11, %vm1277_vm3  ;;  %vm385_vm13 = vcmp.eq.s32.totalorder %v1664_v27, %v1556_v25  ;;  %v1279_v27 = vmov -inf  }
  0xe2   :  { %vm413_vm9 = vmxor %vm376_vm7, %vm1277_vm3  ;;  %vm30_vm7 = vcmask 7168   ;;  %v303_v61 = vsub.f32 %v271_v16, %v287_v7  ;;  %v307_v19 = vsub.f32 %v275_v23, %v291_v3 }
  0xe3   :  { %vm434_vm0 = vmand %vm418_vm15, %vm1568_vm2  ;;  %51 = vst.msk [vmem:[#allocation3 + $0x20] sm:$0xff] %vm30_vm7, %v1278_v9 }
  0xe4   :  { %vm429_vm1 = vmand %vm413_vm9, %vm1568_vm2  ;;  %v498_v20 = vsel %vm434_vm0, %v299_v62, inf  ;;  %47 = vst.msk [vmem:[#allocation3] sm:$0xff] %vm30_vm7, %v1278_v9 }
  0xe5   :  { %477 = vmax.xlane.f32.xlu1 %v452_v41  ;;  %v493_v5 = vsel %vm429_vm1, %v294_v48, inf  ;;  %48 = vst.msk [vmem:[#allocation3 + $0x8] sm:$0xff] %vm30_vm7, %v1278_v9  ;;  %vm406_vm5 = vmand %vm385_vm13, %vm1568_vm2 }
  0xe6   :  { %509 = vmin.xlane.f32.xlu0 %v492_v42  ;;  %485 = vmax.xlane.f32.xlu2 %v456_v44  ;;  %49 = vst.msk [vmem:[#allocation3 + $0x10] sm:$0xff] %vm30_vm7, %v1278_v9  ;;  %vm410_vm12 = vmand %vm389_vm14, %vm1568_vm2  ;;  %v454_v17 = vsel %vm406_vm5, %v303_v61, -inf }
  0xe7   :  { %50 = vst.msk [vmem:[#allocation3 + $0x18] sm:$0xff] %vm30_vm7, %v1278_v9  ;;  %v458_v15 = vsel %vm410_vm12, %v307_v19, -inf  ;;  %vm424_vm15 = vmxor %vm387_vm4, %vm1277_vm3 }
  0xe8   :  { %52 = vst.msk [vmem:[#allocation3 + $0x28] sm:$0xff] %vm30_vm7, %v1278_v9  ;;  %vm422_vm9 = vmxor %vm385_vm13, %vm1277_vm3 }
  0xe9   :  { %53 = vst.msk [vmem:[#allocation3 + $0x30] sm:$0xff] %vm30_vm7, %v1278_v9  ;;  %vm440_vm8 = vmand %vm424_vm15, %vm1568_vm2 }
  0xea   :  { %54 = vst.msk [vmem:[#allocation3 + $0x38] sm:$0xff] %vm30_vm7, %v1278_v9  ;;  %vm438_vm0 = vmand %vm422_vm9, %vm1568_vm2  ;;  %v504_v12 = vsel %vm440_vm8, %v1700_v11, inf  ;;  %v592_v25 = vld [vmem:[#allocation3 + $0x20] sm:$0xff] }
  0xeb   :  { %55 = vst.msk [vmem:[#allocation3 + $0x40] sm:$0xff] %vm30_vm7, %v1278_v9  ;;  %v502_v30 = vsel %vm438_vm0, %v303_v61, inf  ;;  %vm402_vm4 = vmand %vm381_vm11, %vm1568_vm2  ;;  %v588_v45 = vld [vmem:[#allocation3] sm:$0xff] }
  0xec   :  { %56 = vst.msk [vmem:[#allocation3 + $0x48] sm:$0xff] %vm30_vm7, %v1278_v9  ;;  %v450_v24 = vsel %vm402_vm4, %v299_v62, -inf  ;;  %vm425_vm1 = vmxor %vm388_vm10, %vm1277_vm3 }
  0xed   :  { %463 = vmax.xlane.f32.xlu1 %v445_v29  ;;  %57 = vst.msk [vmem:[#allocation3 + $0x50] sm:$0xff] %vm30_vm7, %v1278_v9  ;;  %vm441_vm6 = vmand %vm425_vm1, %vm1568_vm2 }
  0xee   :  { %487 = vmax.xlane.f32.xlu0 %v457_v52  ;;  %525 = vmin.xlane.f32.xlu2 %v500_v53  ;;  %58 = vst.msk [vmem:[#allocation3 + $0x58] sm:$0xff] %vm30_vm7, %v1278_v9  ;;  %v505_v50 = vsel %vm441_vm6, %v1725_v49, inf  ;;  %vm426_vm11 = vmxor %vm389_vm14, %vm1277_vm3 }
  0xef   :  { %59 = vst.msk [vmem:[#allocation3 + $0x60] sm:$0xff] %vm30_vm7, %v1278_v9  ;;  %vm442_vm10 = vmand %vm426_vm11, %vm1568_vm2 }
  0xf0   :  { %60 = vst.msk [vmem:[#allocation3 + $0x68] sm:$0xff] %vm30_vm7, %v1278_v9  ;;  %v506_v28 = vsel %vm442_vm10, %v307_v19, inf }
  0xf1   :  { %61 = vst.msk [vmem:[#allocation3 + $0x70] sm:$0xff] %vm30_vm7, %v1278_v9 }
  0xf2   :  { %62 = vst.msk [vmem:[#allocation3 + $0x78] sm:$0xff] %vm30_vm7, %v1278_v9  ;;  %v596_v43 = vld [vmem:[#allocation3 + $0x40] sm:$0xff] }
  0xf3   :  { %31 = vst.msk [vmem:[#allocation2] sm:$0xff] %vm30_vm7, %v1279_v27 }
  0xf4   :  { %32 = vst.msk [vmem:[#allocation2 + $0x8] sm:$0xff] %vm30_vm7, %v1279_v27 }
  0xf5   :  { %471 = vmax.xlane.f32.xlu1 %v449_v10  ;;  %33 = vst.msk [vmem:[#allocation2 + $0x10] sm:$0xff] %vm30_vm7, %v1279_v27 }
  0xf6   :  { %527 = vmin.xlane.f32.xlu0 %v501_v22  ;;  %519 = vmin.xlane.f32.xlu2 %v497_v59  ;;  %34 = vst.msk [vmem:[#allocation2 + $0x18] sm:$0xff] %vm30_vm7, %v1279_v27  ;;  %v593_v22 = vld [vmem:[#allocation3 + $0x28] sm:$0xff]  ;;  %v600_v59 = vld [vmem:[#allocation3 + $0x60] sm:$0xff] }
  0xf7   :  { %35 = vst.msk [vmem:[#allocation2 + $0x20] sm:$0xff] %vm30_vm7, %v1279_v27 }
  0xf8   :  { %36 = vst.msk [vmem:[#allocation2 + $0x28] sm:$0xff] %vm30_vm7, %v1279_v27 }
  0xf9   :  { %37 = vst.msk [vmem:[#allocation2 + $0x30] sm:$0xff] %vm30_vm7, %v1279_v27 }
  0xfa   :  { %38 = vst.msk [vmem:[#allocation2 + $0x38] sm:$0xff] %vm30_vm7, %v1279_v27  ;;  %v539_v0 = vld [vmem:[#allocation2] sm:$0xff] }
  0xfb   :  { %39 = vst.msk [vmem:[#allocation2 + $0x40] sm:$0xff] %vm30_vm7, %v1279_v27  ;;  %v540_v44 = vld [vmem:[#allocation2 + $0x8] sm:$0xff] }
  0xfc   :  { %40 = vst.msk [vmem:[#allocation2 + $0x48] sm:$0xff] %vm30_vm7, %v1279_v27 }
  0xfd   :  { %511 = vmin.xlane.f32.xlu1 %v493_v5  ;;  %41 = vst.msk [vmem:[#allocation2 + $0x50] sm:$0xff] %vm30_vm7, %v1279_v27 }
  0xfe   :  { %521 = vmin.xlane.f32.xlu0 %v498_v20  ;;  %479 = vmax.xlane.f32.xlu2 %v453_v14  ;;  %42 = vst.msk [vmem:[#allocation2 + $0x58] sm:$0xff] %vm30_vm7, %v1279_v27 }
  0xff   :  { %43 = vst.msk [vmem:[#allocation2 + $0x60] sm:$0xff] %vm30_vm7, %v1279_v27  ;;  %v544_v62 = vld [vmem:[#allocation2 + $0x28] sm:$0xff] }
 0x100   :  { %44 = vst.msk [vmem:[#allocation2 + $0x68] sm:$0xff] %vm30_vm7, %v1279_v27 }
 0x101   :  { %45 = vst.msk [vmem:[#allocation2 + $0x70] sm:$0xff] %vm30_vm7, %v1279_v27 }
 0x102   :  { %46 = vst.msk [vmem:[#allocation2 + $0x78] sm:$0xff] %vm30_vm7, %v1279_v27 }
 0x105   :  { %489 = vmax.xlane.f32.xlu1 %v458_v15 }
 0x106   :  { %481 = vmax.xlane.f32.xlu0 %v454_v17  ;;  %465 = vmax.xlane.f32.xlu2 %v446_v35  ;;  %v551_v34 = vld [vmem:[#allocation2 + $0x60] sm:$0xff] }
 0x107   :  { %v547_v35 = vld [vmem:[#allocation2 + $0x40] sm:$0xff] }
 0x10d   :  { %529 = vmin.xlane.f32.xlu1 %v502_v30 }
 0x10e   :  { %533 = vmin.xlane.f32.xlu0 %v504_v12  ;;  %473 = vmax.xlane.f32.xlu2 %v450_v24 }
 0x115   :  { %535 = vmin.xlane.f32.xlu1 %v505_v50 }
 0x116   :  { %513 = vmin.xlane.f32.xlu2 %v1684_v26  ;;  %v543_v26 = vld [vmem:[#allocation2 + $0x20] sm:$0xff] }
 0x11e   :  { %537 = vmin.xlane.f32.xlu2 %v506_v28 }
 0x139   :  { %v516_v4 = vpop.xlane.xlu0 %515  ;;  %v460_v31 = vpop.xlane.xlu2 %459 }
 0x13a   :  { %v608_v32 = vmin.f32 %v592_v25, %v516_v4  ;;  %v555_v33 = vmax.f32 %v539_v0, %v460_v31  ;;  %v548_v0 = vld [vmem:[#allocation2 + $0x48] sm:$0xff] }
 0x13b   :  { %v552_v31 = vld [vmem:[#allocation2 + $0x68] sm:$0xff] }
 0x13c   :  { %624 = vst.msk [vmem:[#allocation3 + $0x20] sm:$0xff] %vm30_vm7, %v608_v32 }
 0x13d   :  { %572 = vst.msk [vmem:[#allocation2] sm:$0xff] %vm30_vm7, %v555_v33 }
 0x140   :  { %v484_v36 = vpop.xlane.xlu1 %483 }
 0x141   :  { %v476_v37 = vpop.xlane.xlu0 %475  ;;  %v567_v38 = vmax.f32 %v551_v34, %v484_v36  ;;  %v468_v40 = vpop.xlane.xlu2 %467 }
 0x142   :  { %v563_v39 = vmax.f32 %v547_v35, %v476_v37  ;;  %v559_v13 = vmax.f32 %v543_v26, %v468_v40  ;;  %v589_v37 = vld [vmem:[#allocation3 + $0x8] sm:$0xff] }
 0x143   :  { %v867_v11 = vld [vmem:[#allocation3 + $0x20] sm:$0xff]  ;;  %584 = vst.msk [vmem:[#allocation2 + $0x60] sm:$0xff] %vm30_vm7, %v567_v38 }
 0x144   :  { %v1869_v21 = vmax.f32 %v867_v11, 1e-12  ;;  %v639_v41 = vld [vmem:[#allocation2] sm:$0xff]  ;;  %580 = vst.msk [vmem:[#allocation2 + $0x40] sm:$0xff] %vm30_vm7, %v563_v39 }
 0x145   :  { %v1872_v42 = vmax.f32 %v639_v41, 1e-12  ;;  %576 = vst.msk [vmem:[#allocation2 + $0x20] sm:$0xff] %vm30_vm7, %v559_v13 }
 0x146   :  { %1212 = vrsqrt.f32 %v1869_v21  ;;  %vm950_vm2 = vcmp.eq.f32.partialorder %v1869_v21, inf  ;;  %v953_v34 = vand.u32 2147483648, %v1869_v21  ;;  %vm952_vm13 = vcmp.eq.f32.partialorder %v1869_v21, 0.0 }
 0x147   :  { %1214 = vrsqrt.f32 %v1872_v42  ;;  %v681_v38 = vand.u32 2147483648, %v1872_v42  ;;  %vm678_vm14 = vcmp.eq.f32.partialorder %v1872_v42, inf  ;;  %vm680_vm15 = vcmp.eq.f32.partialorder %v1872_v42, 0.0 }
 0x148   :  { %v524_v46 = vpop.xlane.xlu1 %523 }
 0x149   :  { %v462_v47 = vpop.xlane.xlu0 %461  ;;  %v612_v48 = vmin.f32 %v596_v43, %v524_v46  ;;  %v508_v49 = vpop.xlane.xlu2 %507 }
 0x14a   :  { %v556_v2 = vmax.f32 %v540_v44, %v462_v47  ;;  %v651_v18 = vld [vmem:[#allocation2 + $0x60] sm:$0xff]  ;;  %v604_v51 = vmin.f32 %v588_v45, %v508_v49 }
 0x14b   :  { %v1878_v52 = vmax.f32 %v651_v18, 1e-12  ;;  %v647_v53 = vld [vmem:[#allocation2 + $0x40] sm:$0xff]  ;;  %628 = vst.msk [vmem:[#allocation3 + $0x40] sm:$0xff] %vm30_vm7, %v612_v48 }
 0x14c   :  { %v1213_v29 = vpop.eup %1212  ;;  %v1884_v56 = vmax.f32 %v647_v53, 1e-12  ;;  %v643_v57 = vld [vmem:[#allocation2 + $0x20] sm:$0xff]  ;;  %620 = vst.msk [vmem:[#allocation3] sm:$0xff] %vm30_vm7, %v604_v51 }
 0x14d   :  { %v1881_v54 = vpop.eup %1214  ;;  %v944_v55 = vmul.f32 %v1213_v29, %v1869_v21  ;;  %1216 = vrsqrt.f32 %v1878_v52  ;;  %573 = vst.msk [vmem:[#allocation2 + $0x8] sm:$0xff] %vm30_vm7, %v556_v2  ;;  %v1892_v10 = vmax.f32 %v643_v57, 1e-12  ;;  %vm822_vm0 = vcmp.eq.f32.partialorder %v1878_v52, inf }
 0x14e   :  { %v672_v58 = vmul.f32 %v1881_v54, %v1872_v42  ;;  %1218 = vrsqrt.f32 %v1884_v56  ;;  %v777_v39 = vand.u32 2147483648, %v1884_v56  ;;  %vm774_vm5 = vcmp.eq.f32.partialorder %v1884_v56, inf }
 0x14f   :  { %v945_v8 = vmul.f32 %v1213_v29, %v944_v55  ;;  %1220 = vrsqrt.f32 %v1892_v10  ;;  %vm726_vm3 = vcmp.eq.f32.partialorder %v1892_v10, inf  ;;  %vm728_vm12 = vcmp.eq.f32.partialorder %v1892_v10, 0.0 }
 0x150   :  { %v518_v60 = vpop.xlane.xlu1 %517  ;;  %v673_v7 = vmul.f32 %v1881_v54, %v672_v58  ;;  %v729_v55 = vand.u32 2147483648, %v1892_v10  ;;  %vm776_vm9 = vcmp.eq.f32.partialorder %v1884_v56, 0.0  ;;  %vm824_vm11 = vcmp.eq.f32.partialorder %v1878_v52, 0.0 }
 0x151   :  { %v470_v63 = vpop.xlane.xlu0 %469  ;;  %v946_v1 = vmul.f32 0.5, %v945_v8  ;;  %v532_v3 = vpop.xlane.xlu2 %531  ;;  %v609_v20 = vmin.f32 %v593_v22, %v518_v60 }
 0x152   :  { %v871_v5 = vld [vmem:[#allocation3 + $0x40] sm:$0xff]  ;;  %v616_v6 = vmin.f32 %v600_v59, %v532_v3  ;;  %v560_v9 = vmax.f32 %v544_v62, %v470_v63  ;;  %v674_v30 = vmul.f32 0.5, %v673_v7 }
 0x153   :  { %v1896_v14 = vpop.eup %1216  ;;  %v1898_v16 = vmax.f32 %v871_v5, 1e-12  ;;  %v863_v23 = vld [vmem:[#allocation3] sm:$0xff]  ;;  %625 = vst.msk [vmem:[#allocation3 + $0x28] sm:$0xff] %vm30_vm7, %v609_v20  ;;  %v947_v17 = vsub.f32 1.5, %v946_v1 }
 0x154   :  { %v1219_v61 = vpop.eup %1218  ;;  %v816_v19 = vmul.f32 %v1896_v14, %v1878_v52  ;;  %v1902_v15 = vmax.f32 %v863_v23, 1e-12  ;;  %632 = vst.msk [vmem:[#allocation3 + $0x60] sm:$0xff] %vm30_vm7, %v616_v6  ;;  %v640_v28 = vld [vmem:[#allocation2 + $0x8] sm:$0xff]  ;;  %v675_v35 = vsub.f32 1.5, %v674_v30 }
 0x155   :  { %v768_v12 = vmul.f32 %v1219_v61, %v1884_v56  ;;  %1222 = vrsqrt.f32 %v1898_v16  ;;  %577 = vst.msk [vmem:[#allocation2 + $0x28] sm:$0xff] %vm30_vm7, %v560_v9  ;;  %v1221_v24 = vpop.eup %1220  ;;  %v948_v33 = vmul.f32 %v1213_v29, %v947_v17  ;;  %v1916_v11 = vmax.f32 %v640_v28, 1e-12 }
 0x156   :  { %v817_v50 = vmul.f32 %v1896_v14, %v816_v19  ;;  %1224 = vrsqrt.f32 %v1902_v15  ;;  %v720_v25 = vmul.f32 %v1221_v24, %v1892_v10  ;;  %v676_v29 = vmul.f32 %v1881_v54, %v675_v35 }
 0x157   :  { %v769_v27 = vmul.f32 %v1219_v61, %v768_v12  ;;  %v949_v51 = vmul.f32 %v948_v33, %v1869_v21  ;;  %1226 = vrsqrt.f32 %v1916_v11  ;;  %vm998_vm8 = vcmp.eq.f32.partialorder %v1898_v16, inf }
 0x158   :  { %v478_v4 = vpop.xlane.xlu1 %477  ;;  %v721_v40 = vmul.f32 %v1221_v24, %v720_v25  ;;  %v818_v41 = vmul.f32 0.5, %v817_v50  ;;  %v677_v20 = vmul.f32 %v676_v29, %v1872_v42  ;;  %vm1000_vm4 = vcmp.eq.f32.partialorder %v1898_v16, 0.0 }
 0x159   :  { %v510_v32 = vpop.xlane.xlu0 %509  ;;  %v770_v26 = vmul.f32 0.5, %v769_v27  ;;  %v486_v36 = vpop.xlane.xlu2 %485  ;;  %v564_v44 = vmax.f32 %v548_v0, %v478_v4  ;;  %v951_v5 = vsel %vm950_vm2, %v1869_v21, %v949_v51  ;;  %v1001_v12 = vand.u32 2147483648, %v1898_v16 }
 0x15a   :  { %v568_v45 = vmax.f32 %v552_v31, %v486_v36  ;;  %v722_v46 = vmul.f32 0.5, %v721_v40  ;;  %v868_v48 = vld [vmem:[#allocation3 + $0x28] sm:$0xff]  ;;  %v605_v2 = vmin.f32 %v589_v37, %v510_v32  ;;  %v819_v22 = vsub.f32 1.5, %v818_v41 }
 0x15b   :  { %v1223_v13 = vpop.eup %1222  ;;  %v771_v43 = vsub.f32 1.5, %v770_v26  ;;  %v875_v49 = vld [vmem:[#allocation3 + $0x60] sm:$0xff]  ;;  %581 = vst.msk [vmem:[#allocation2 + $0x48] sm:$0xff] %vm30_vm7, %v564_v44  ;;  %v1931_v59 = vmax.f32 %v868_v48, 1e-12  ;;  %vm902_vm1 = vcmp.eq.f32.partialorder %v1902_v15, inf  ;;  %v679_v25 = vsel %vm678_vm14, %v1872_v42, %v677_v20 }
 0x15c   :  { %v992_v47 = vmul.f32 %v1223_v13, %v1898_v16  ;;  %v1225_v18 = vpop.eup %1224  ;;  %v723_v57 = vsub.f32 1.5, %v722_v46  ;;  %585 = vst.msk [vmem:[#allocation2 + $0x68] sm:$0xff] %vm30_vm7, %v568_v45  ;;  %v1933_v60 = vmax.f32 %v875_v49, 1e-12  ;;  %v644_v62 = vld [vmem:[#allocation2 + $0x28] sm:$0xff]  ;;  %v820_v30 = vmul.f32 %v1896_v14, %v819_v22 }
 0x15d   :  { %v772_v53 = vmul.f32 %v1219_v61, %v771_v43  ;;  %v896_v8 = vmul.f32 %v1225_v18, %v1902_v15  ;;  %621 = vst.msk [vmem:[#allocation3 + $0x8] sm:$0xff] %vm30_vm7, %v605_v2  ;;  %1228 = vrsqrt.f32 %v1931_v59  ;;  %v1953_v17 = vmax.f32 %v644_v62, 1e-12 }
 0x15e   :  { %v993_v58 = vmul.f32 %v1223_v13, %v992_v47  ;;  %v724_v54 = vmul.f32 %v1221_v24, %v723_v57  ;;  %1230 = vrsqrt.f32 %v1933_v60  ;;  %v1959_v24 = vpop.eup %1226  ;;  %v954_v14 = vsel %vm952_vm13, %v953_v34, %v951_v5 }
 0x15f   :  { %v897_v1 = vmul.f32 %v1225_v18, %v896_v8  ;;  %v773_v6 = vmul.f32 %v772_v53, %v1884_v56  ;;  %1232 = vrsqrt.f32 %v1953_v17  ;;  %v821_v34 = vmul.f32 %v820_v30, %v1878_v52 }
 0x160   :  { %v994_v63 = vmul.f32 0.5, %v993_v58  ;;  %v1939_v7 = vpop.xlane.xlu1 %463  ;;  %v725_v9 = vmul.f32 %v724_v54, %v1892_v10  ;;  %vm904_vm6 = vcmp.eq.f32.partialorder %v1902_v15, 0.0  ;;  %v905_v26 = vand.u32 2147483648, %v1902_v15 }
 0x161   :  { %v1941_v3 = vpop.xlane.xlu0 %487  ;;  %v1949_v23 = vpop.xlane.xlu2 %525  ;;  %v898_v19 = vmul.f32 0.5, %v897_v1  ;;  %v775_v0 = vsel %vm774_vm5, %v1884_v56, %v773_v6  ;;  %v684_v36 = vmul.f32 %v1959_v24, %v1916_v11  ;;  %v682_v45 = vsel %vm680_vm15, %v681_v38, %v679_v25 }
 0x162   :  { %v995_v61 = vsub.f32 1.5, %v994_v63  ;;  %v727_v50 = vsel %vm726_vm3, %v1892_v10, %v725_v9  ;;  %v648_v35 = vld [vmem:[#allocation2 + $0x48] sm:$0xff]  ;;  %v778_v46 = vsel %vm776_vm9, %v777_v39, %v775_v0  ;;  %v823_v38 = vsel %vm822_vm0, %v1878_v52, %v821_v34  ;;  %v541_v9 = vld [vmem:[#allocation2 + $0x10] sm:$0xff] }
 0x163   :  { %v899_v28 = vsub.f32 1.5, %v898_v19  ;;  %v730_v4 = vsel %vm728_vm12, %v729_v55, %v727_v50  ;;  %v1229_v21 = vpop.eup %1228  ;;  %v2003_v48 = vmax.f32 %v648_v35, 1e-12  ;;  %v685_v55 = vmul.f32 %v1959_v24, %v684_v36  ;;  %v652_v63 = vld [vmem:[#allocation2 + $0x68] sm:$0xff] }
 0x164   :  { %v996_v27 = vmul.f32 %v1223_v13, %v995_v61  ;;  %v1091_v31 = vsub.f32 %v730_v4, %v954_v14  ;;  %v956_v13 = vmul.f32 %v1229_v21, %v1931_v59  ;;  %v1231_v44 = vpop.eup %1230  ;;  %v825_v58 = vand.u32 2147483648, %v1878_v52  ;;  %v864_v6 = vld [vmem:[#allocation3 + $0x8] sm:$0xff] }
 0x165   :  { %v900_v33 = vmul.f32 %v1225_v18, %v899_v28  ;;  %1234 = vrsqrt.f32 %v2003_v48  ;;  %v1233_v39 = vpop.eup %1232  ;;  %v686_v19 = vmul.f32 0.5, %v685_v55  ;;  %vm962_vm10 = vcmp.eq.f32.partialorder %v1931_v59, inf  ;;  %v597_v52 = vld [vmem:[#allocation3 + $0x48] sm:$0xff] }
 0x166   :  { %v997_v32 = vmul.f32 %v996_v27, %v1898_v16  ;;  %v1107_v37 = vadd.f32 0.3, %v1091_v31  ;;  %v957_v42 = vmul.f32 %v1229_v21, %v956_v13  ;;  %v2025_v1 = vsel %vm824_vm11, %v825_v58, %v823_v38  ;;  %v598_v13 = vld [vmem:[#allocation3 + $0x50] sm:$0xff] }
 0x167   :  { %v901_v40 = vmul.f32 %v900_v33, %v1902_v15  ;;  %vm964_vm2 = vcmp.eq.f32.partialorder %v1931_v59, 0.0  ;;  %v965_v28 = vand.u32 2147483648, %v1931_v59  ;;  %v2038_v0 = vmax.f32 %v652_v63, 1e-12 }
 0x168   :  { %v999_v10 = vsel %vm998_vm8, %v1898_v16, %v997_v32  ;;  %v1989_v41 = vpop.xlane.xlu1 %471  ;;  %v1123_v2 = vmax.f32 %v1107_v37, 0.0  ;;  %v1040_v16 = vmul.f32 %v1231_v44, %v1933_v60  ;;  %v958_v57 = vmul.f32 0.5, %v957_v42  ;;  %v545_v37 = vld [vmem:[#allocation2 + $0x30] sm:$0xff] }
 0x169   :  { %v1991_v43 = vpop.xlane.xlu0 %527  ;;  %v1002_v47 = vsel %vm1000_vm4, %v1001_v12, %v999_v10  ;;  %v2005_v49 = vpop.xlane.xlu2 %519  ;;  %v903_v51 = vsel %vm902_vm1, %v1902_v15, %v901_v40  ;;  %v732_v15 = vmul.f32 %v1233_v39, %v1953_v17  ;;  %v553_v12 = vld [vmem:[#allocation2 + $0x70] sm:$0xff]  ;;  %v2047_v32 = vmax.f32 %v864_v6, 1e-12 }
 0x16a   :  { %v1095_v18 = vsub.f32 %v778_v46, %v1002_v47  ;;  %v906_v56 = vsel %vm904_vm6, %v905_v26, %v903_v51  ;;  %1139 = vst.msk [vmem:[%s2434_s7 + $0x20] sm:$0xff] %vm30_vm7, %v1123_v2  ;;  %v1041_v8 = vmul.f32 %v1231_v44, %v1040_v16  ;;  %v959_v54 = vsub.f32 1.5, %v958_v57  ;;  %v595_v16 = vld [vmem:[#allocation3 + $0x38] sm:$0xff] }
 0x16b   :  { %v1087_v53 = vsub.f32 %v682_v45, %v906_v56  ;;  %v733_v20 = vmul.f32 %v1233_v39, %v732_v15  ;;  %v2034_v27 = vpop.eup %1234  ;;  %v557_v33 = vmax.f32 %v541_v9, %v1939_v7  ;;  %v613_v26 = vmin.f32 %v597_v52, %v1949_v23  ;;  %v594_v7 = vld [vmem:[#allocation3 + $0x30] sm:$0xff]  ;;  %v550_v9 = vld [vmem:[#allocation2 + $0x58] sm:$0xff] }
 0x16c   :  { %v1111_v29 = vadd.f32 0.3, %v1095_v18  ;;  %v1042_v5 = vmul.f32 0.5, %v1041_v8  ;;  %v960_v30 = vmul.f32 %v1229_v21, %v959_v54  ;;  %v780_v31 = vmul.f32 %v2034_v27, %v2003_v48  ;;  %v549_v18 = vld [vmem:[#allocation2 + $0x50] sm:$0xff] }
 0x16d   :  { %v1103_v62 = vadd.f32 0.3, %v1087_v53  ;;  %v734_v25 = vmul.f32 0.5, %v733_v20  ;;  %v569_v36 = vmax.f32 %v553_v12, %v1941_v3  ;;  %v687_v40 = vsub.f32 1.5, %v686_v19  ;;  %574 = vst.msk [vmem:[#allocation2 + $0x10] sm:$0xff] %vm30_vm7, %v557_v33  ;;  %v590_v3 = vld [vmem:[#allocation3 + $0x10] sm:$0xff] }
 0x16e   :  { %v1127_v22 = vmax.f32 %v1111_v29, 0.0  ;;  %v1043_v14 = vsub.f32 1.5, %v1042_v5  ;;  %v961_v4 = vmul.f32 %v960_v30, %v1931_v59  ;;  %vm1046_vm3 = vcmp.eq.f32.partialorder %v1933_v60, inf  ;;  %629 = vst.msk [vmem:[#allocation3 + $0x48] sm:$0xff] %vm30_vm7, %v613_v26 }
 0x16f   :  { %v1119_v61 = vmax.f32 %v1103_v62, 0.0  ;;  %v735_v34 = vsub.f32 1.5, %v734_v25  ;;  %vm1048_vm13 = vcmp.eq.f32.partialorder %v1933_v60, 0.0  ;;  %1236 = vrsqrt.f32 %v2047_v32  ;;  %586 = vst.msk [vmem:[#allocation2 + $0x70] sm:$0xff] %vm30_vm7, %v569_v36 }
 0x170   :  { %1143 = vst.msk [vmem:[%s2434_s7 + $0x40] sm:$0xff] %vm30_vm7, %v1127_v22  ;;  %v2032_v50 = vpop.xlane.xlu1 %511  ;;  %v1044_v21 = vmul.f32 %v1231_v44, %v1043_v14  ;;  %v1049_v45 = vand.u32 2147483648, %v1933_v60  ;;  %vm738_vm14 = vcmp.eq.f32.partialorder %v1953_v17, inf  ;;  %v963_v46 = vsel %vm962_vm10, %v1931_v59, %v961_v4 }
 0x171   :  { %1135 = vst.msk [vmem:[%s2434_s7] sm:$0xff] %vm30_vm7, %v1119_v61  ;;  %v2050_v35 = vpop.xlane.xlu0 %521  ;;  %v480_v10 = vpop.xlane.xlu2 %479  ;;  %v736_v23 = vmul.f32 %v1233_v39, %v735_v34  ;;  %v781_v47 = vmul.f32 %v2034_v27, %v780_v31  ;;  %1238 = vrsqrt.f32 %v2038_v0  ;;  %v561_v2 = vmax.f32 %v545_v37, %v1989_v41 }
 0x172   :  { %v1045_v44 = vmul.f32 %v1044_v21, %v1933_v60  ;;  %v610_v38 = vmin.f32 %v594_v7, %v2005_v49  ;;  %v614_v56 = vmin.f32 %v598_v13, %v1991_v43  ;;  %v688_v39 = vmul.f32 %v1959_v24, %v687_v40 }
 0x173   :  { %v737_v42 = vmul.f32 %v736_v23, %v1953_v17  ;;  %v741_v53 = vand.u32 2147483648, %v1953_v17  ;;  %578 = vst.msk [vmem:[#allocation2 + $0x30] sm:$0xff] %vm30_vm7, %v561_v2  ;;  %v606_v41 = vmin.f32 %v590_v3, %v2032_v50  ;;  %vm740_vm5 = vcmp.eq.f32.partialorder %v1953_v17, 0.0  ;;  %v542_v50 = vld [vmem:[#allocation2 + $0x18] sm:$0xff] }
 0x174   :  { %v1047_v51 = vsel %vm1046_vm3, %v1933_v60, %v1045_v44  ;;  %626 = vst.msk [vmem:[#allocation3 + $0x30] sm:$0xff] %vm30_vm7, %v610_v38  ;;  %v565_v24 = vmax.f32 %v549_v18, %v480_v10  ;;  %v554_v60 = vld [vmem:[#allocation2 + $0x78] sm:$0xff]  ;;  %v966_v58 = vsel %vm964_vm2, %v965_v28, %v963_v46  ;;  %v782_v15 = vmul.f32 0.5, %v781_v47 }
 0x175   :  { %v1050_v29 = vsel %vm1048_vm13, %v1049_v45, %v1047_v51  ;;  %v739_v49 = vsel %vm738_vm14, %v1953_v17, %v737_v42  ;;  %v1237_v43 = vpop.eup %1236  ;;  %630 = vst.msk [vmem:[#allocation3 + $0x50] sm:$0xff] %vm30_vm7, %v614_v56  ;;  %v611_v22 = vmin.f32 %v595_v16, %v2050_v35  ;;  %v689_v5 = vmul.f32 %v688_v39, %v1916_v11  ;;  %v872_v59 = vld [vmem:[#allocation3 + $0x48] sm:$0xff]  ;;  %v599_v35 = vld [vmem:[#allocation3 + $0x58] sm:$0xff] }
 0x176   :  { %v1099_v57 = vsub.f32 %v2025_v1, %v1050_v29  ;;  %v742_v8 = vsel %vm740_vm5, %v741_v53, %v739_v49  ;;  %v908_v63 = vmul.f32 %v1237_v43, %v2047_v32  ;;  %v641_v1 = vld [vmem:[#allocation2 + $0x10] sm:$0xff]  ;;  %622 = vst.msk [vmem:[#allocation3 + $0x10] sm:$0xff] %vm30_vm7, %v606_v41  ;;  %v2099_v12 = vmax.f32 %v872_v59, 1e-12 }
 0x177   :  { %v1092_v54 = vsub.f32 %v742_v8, %v966_v58  ;;  %v2093_v17 = vpop.eup %1238  ;;  %v2096_v20 = vmax.f32 %v641_v1, 1e-12  ;;  %582 = vst.msk [vmem:[#allocation2 + $0x50] sm:$0xff] %vm30_vm7, %v565_v24  ;;  %v783_v14 = vsub.f32 1.5, %v782_v15  ;;  %vm690_vm12 = vcmp.eq.f32.partialorder %v1916_v11, inf  ;;  %v653_v3 = vld [vmem:[#allocation2 + $0x70] sm:$0xff] }
 0x178   :  { %v490_v55 = vpop.xlane.xlu1 %489  ;;  %v1115_v62 = vadd.f32 0.3, %v1099_v57  ;;  %v909_v52 = vmul.f32 %v1237_v43, %v908_v63  ;;  %627 = vst.msk [vmem:[#allocation3 + $0x38] sm:$0xff] %vm30_vm7, %v611_v22  ;;  %v828_v21 = vmul.f32 %v2093_v17, %v2038_v0  ;;  %v691_v37 = vsel %vm690_vm12, %v1916_v11, %v689_v5 }
 0x179   :  { %v570_v6 = vmax.f32 %v554_v60, %v490_v55  ;;  %v482_v61 = vpop.xlane.xlu0 %481  ;;  %v1108_v30 = vadd.f32 0.3, %v1092_v54  ;;  %v466_v28 = vpop.xlane.xlu2 %465  ;;  %1240 = vrsqrt.f32 %v2096_v20  ;;  %v784_v40 = vmul.f32 %v2034_v27, %v783_v14 }
 0x17a   :  { %v1131_v19 = vmax.f32 %v1115_v62, 0.0  ;;  %v910_v4 = vmul.f32 0.5, %v909_v52  ;;  %v645_v31 = vld [vmem:[#allocation2 + $0x30] sm:$0xff]  ;;  %v566_v33 = vmax.f32 %v550_v9, %v482_v61  ;;  %1242 = vrsqrt.f32 %v2099_v12 }
 0x17b   :  { %v1124_v25 = vmax.f32 %v1108_v30, 0.0  ;;  %v869_v34 = vld [vmem:[#allocation3 + $0x30] sm:$0xff]  ;;  %587 = vst.msk [vmem:[#allocation2 + $0x78] sm:$0xff] %vm30_vm7, %v570_v6  ;;  %v558_v26 = vmax.f32 %v542_v50, %v466_v28  ;;  %v2118_v7 = vmax.f32 %v645_v31, 1e-12  ;;  %v693_v45 = vand.u32 2147483648, %v1916_v11 }
 0x17c   :  { %1147 = vst.msk [vmem:[%s2434_s7 + $0x60] sm:$0xff] %vm30_vm7, %v1131_v19  ;;  %v911_v10 = vsub.f32 1.5, %v910_v4  ;;  %v2120_v13 = vmax.f32 %v869_v34, 1e-12  ;;  %vm692_vm15 = vcmp.eq.f32.partialorder %v1916_v11, 0.0  ;;  %v829_v47 = vmul.f32 %v2093_v17, %v828_v21  ;;  %v873_v27 = vld [vmem:[#allocation3 + $0x50] sm:$0xff] }
 0x17d   :  { %1140 = vst.msk [vmem:[%s2434_s7 + $0x28] sm:$0xff] %vm30_vm7, %v1124_v25  ;;  %1244 = vrsqrt.f32 %v2118_v7  ;;  %v694_v2 = vsel %vm692_vm15, %v693_v45, %v691_v37  ;;  %vm914_vm9 = vcmp.eq.f32.partialorder %v2047_v32, inf  ;;  %v865_v42 = vld [vmem:[#allocation3 + $0x10] sm:$0xff]  ;;  %v785_v11 = vmul.f32 %v784_v40, %v2003_v48 }
 0x17e   :  { %v912_v23 = vmul.f32 %v1237_v43, %v911_v10  ;;  %583 = vst.msk [vmem:[#allocation2 + $0x58] sm:$0xff] %vm30_vm7, %v566_v33  ;;  %v917_v56 = vand.u32 2147483648, %v2047_v32  ;;  %v2137_v16 = vmax.f32 %v653_v3, 1e-12  ;;  %1246 = vrsqrt.f32 %v2120_v13  ;;  %v649_v41 = vld [vmem:[#allocation2 + $0x50] sm:$0xff] }
 0x17f   :  { %v2124_v46 = vpop.eup %1240  ;;  %575 = vst.msk [vmem:[#allocation2 + $0x18] sm:$0xff] %vm30_vm7, %v558_v26  ;;  %vm916_vm8 = vcmp.eq.f32.partialorder %v2047_v32, 0.0  ;;  %v2143_v53 = vmax.f32 %v873_v27, 1e-12  ;;  %v2145_v55 = vmul.f32 0.5, %v829_v47  ;;  %vm786_vm0 = vcmp.eq.f32.partialorder %v2003_v48, inf }
 0x180   :  { %v530_v36 = vpop.xlane.xlu1 %529  ;;  %v913_v18 = vmul.f32 %v912_v23, %v2047_v32  ;;  %v696_v51 = vmul.f32 %v2124_v46, %v2096_v20  ;;  %v1243_v38 = vpop.eup %1242  ;;  %v2148_v24 = vmax.f32 %v865_v42, 1e-12  ;;  %v2154_v8 = vmax.f32 %v649_v41, 1e-12  ;;  %v870_v14 = vld [vmem:[#allocation3 + $0x38] sm:$0xff] }
 0x181   :  { %v615_v44 = vmin.f32 %v599_v35, %v530_v36  ;;  %v1004_v29 = vmul.f32 %v1243_v38, %v2099_v12  ;;  %1248 = vrsqrt.f32 %v2143_v53  ;;  %v789_v15 = vand.u32 2147483648, %v2003_v48  ;;  %v2181_v40 = vpop.xlane.xlu2 %473 }
 0x182   :  { %v915_v39 = vsel %vm914_vm9, %v2047_v32, %v913_v18  ;;  %v697_v49 = vmul.f32 %v2124_v46, %v696_v51  ;;  %v787_v32 = vsel %vm786_vm0, %v2003_v48, %v785_v11  ;;  %1250 = vrsqrt.f32 %v2137_v16 }
 0x183   :  { %631 = vst.msk [vmem:[#allocation3 + $0x58] sm:$0xff] %vm30_vm7, %v615_v44  ;;  %v918_v57 = vsel %vm916_vm8, %v917_v56, %v915_v39  ;;  %v1005_v43 = vmul.f32 %v1243_v38, %v1004_v29  ;;  %v1245_v58 = vpop.eup %1244  ;;  %vm788_vm4 = vcmp.eq.f32.partialorder %v2003_v48, 0.0  ;;  %v831_v1 = vsub.f32 1.5, %v2145_v55 }
 0x184   :  { %v1088_v60 = vsub.f32 %v694_v2, %v918_v57  ;;  %v744_v54 = vmul.f32 %v1245_v58, %v2118_v7  ;;  %v1247_v63 = vpop.eup %1246  ;;  %v698_v5 = vmul.f32 0.5, %v697_v49  ;;  %1252 = vrsqrt.f32 %v2148_v24 }
 0x185   :  { %v1006_v62 = vmul.f32 0.5, %v1005_v43  ;;  %v790_v59 = vsel %vm788_vm4, %v789_v15, %v787_v32  ;;  %v705_v19 = vand.u32 2147483648, %v2096_v20  ;;  %vm1010_vm1 = vcmp.eq.f32.partialorder %v2099_v12, inf  ;;  %v650_v32 = vld [vmem:[#allocation2 + $0x58] sm:$0xff] }
 0x186   :  { %v1104_v22 = vadd.f32 0.3, %v1088_v60  ;;  %v745_v61 = vmul.f32 %v1245_v58, %v744_v54  ;;  %v968_v30 = vmul.f32 %v1247_v63, %v2120_v13  ;;  %1254 = vrsqrt.f32 %v2154_v8  ;;  %v654_v54 = vld [vmem:[#allocation2 + $0x78] sm:$0xff] }
 0x187   :  { %v1007_v9 = vsub.f32 1.5, %v1006_v62  ;;  %v1249_v52 = vpop.eup %1248  ;;  %vm1012_vm6 = vcmp.eq.f32.partialorder %v2099_v12, 0.0  ;;  %v1013_v50 = vand.u32 2147483648, %v2099_v12  ;;  %v699_v4 = vsub.f32 1.5, %v698_v5 }
 0x188   :  { %v1120_v6 = vmax.f32 %v1104_v22, 0.0  ;;  %v746_v28 = vmul.f32 0.5, %v745_v61  ;;  %v2171_v25 = vpop.eup %1250  ;;  %vm750_vm11 = vcmp.eq.f32.partialorder %v2118_v7, inf  ;;  %v969_v31 = vmul.f32 %v1247_v63, %v968_v30 }
 0x189   :  { %v1008_v48 = vmul.f32 %v1243_v38, %v1007_v9  ;;  %v1016_v33 = vmul.f32 %v1249_v52, %v2143_v53  ;;  %vm752_vm10 = vcmp.eq.f32.partialorder %v2118_v7, 0.0  ;;  %v753_v34 = vand.u32 2147483648, %v2118_v7 }
 0x18a   :  { %1136 = vst.msk [vmem:[%s2434_s7 + $0x8] sm:$0xff] %vm30_vm7, %v1120_v6  ;;  %v747_v21 = vsub.f32 1.5, %v746_v28  ;;  %v1253_v26 = vpop.eup %1252  ;;  %v970_v36 = vmul.f32 0.5, %v969_v31  ;;  %vm974_vm2 = vcmp.eq.f32.partialorder %v2120_v13, inf  ;;  %v2179_v10 = vmax.f32 %v870_v14, 1e-12  ;;  %v2227_v14 = vpop.xlane.xlu2 %513 }
 0x18b   :  { %v1009_v35 = vmul.f32 %v1008_v48, %v2099_v12  ;;  %v1017_v37 = vmul.f32 %v1249_v52, %v1016_v33  ;;  %vm702_vm3 = vcmp.eq.f32.partialorder %v2096_v20, inf  ;;  %v840_v45 = vmul.f32 %v2171_v25, %v2137_v16 }
 0x18c   :  { %v748_v23 = vmul.f32 %v1245_v58, %v747_v21  ;;  %v920_v3 = vmul.f32 %v1253_v26, %v2148_v24  ;;  %v1255_v47 = vpop.eup %1254  ;;  %v700_v27 = vmul.f32 %v2124_v46, %v699_v4  ;;  %v971_v18 = vsub.f32 1.5, %v970_v36  ;;  %v642_v21 = vld [vmem:[#allocation2 + $0x18] sm:$0xff] }
 0x18d   :  { %v1011_v44 = vsel %vm1010_vm1, %v2099_v12, %v1009_v35  ;;  %v1018_v51 = vmul.f32 0.5, %v1017_v37  ;;  %v792_v56 = vmul.f32 %v1255_v47, %v2154_v8  ;;  %vm704_vm13 = vcmp.eq.f32.partialorder %v2096_v20, 0.0 }
 0x18e   :  { %v1014_v2 = vsel %vm1012_vm6, %v1013_v50, %v1011_v44  ;;  %v749_v38 = vmul.f32 %v748_v23, %v2118_v7  ;;  %v921_v11 = vmul.f32 %v1253_v26, %v920_v3  ;;  %v972_v39 = vmul.f32 %v1247_v63, %v971_v18  ;;  %v874_v44 = vld [vmem:[#allocation3 + $0x58] sm:$0xff]  ;;  %v534_v23 = vpop.xlane.xlu0 %533 }
 0x18f   :  { %v1096_v42 = vsub.f32 %v790_v59, %v1014_v2  ;;  %vm976_vm14 = vcmp.eq.f32.partialorder %v2120_v13, 0.0  ;;  %v977_v29 = vand.u32 2147483648, %v2120_v13  ;;  %v1019_v41 = vsub.f32 1.5, %v1018_v51 }
 0x190   :  { %v751_v12 = vsel %vm750_vm11, %v2118_v7, %v749_v38  ;;  %vm1022_vm5 = vcmp.eq.f32.partialorder %v2143_v53, inf  ;;  %v922_v57 = vmul.f32 0.5, %v921_v11  ;;  %v701_v49 = vmul.f32 %v700_v27, %v2096_v20 }
 0x191   :  { %v1112_v46 = vadd.f32 0.3, %v1096_v42  ;;  %v973_v60 = vmul.f32 %v972_v39, %v2120_v13  ;;  %v1020_v43 = vmul.f32 %v1249_v52, %v1019_v41  ;;  %v793_v58 = vmul.f32 %v1255_v47, %v792_v56  ;;  %v546_v41 = vld [vmem:[#allocation2 + $0x38] sm:$0xff] }
 0x192   :  { %v841_v22 = vmul.f32 %v2171_v25, %v840_v45  ;;  %v923_v62 = vsub.f32 1.5, %v922_v57  ;;  %1256 = vrsqrt.f32 %v2179_v10  ;;  %v754_v63 = vsel %vm752_vm10, %v753_v34, %v751_v12  ;;  %v601_v45 = vld [vmem:[#allocation3 + $0x68] sm:$0xff]  ;;  %v602_v12 = vld [vmem:[#allocation3 + $0x70] sm:$0xff]  ;;  %v536_v57 = vpop.xlane.xlu1 %535 }
 0x193   :  { %v1128_v15 = vmax.f32 %v1112_v46, 0.0  ;;  %v975_v5 = vsel %vm974_vm2, %v2120_v13, %v973_v60  ;;  %vm1024_vm12 = vcmp.eq.f32.partialorder %v2143_v53, 0.0  ;;  %v1025_v59 = vand.u32 2147483648, %v2143_v53 }
 0x194   :  { %v794_v6 = vmul.f32 0.5, %v793_v58  ;;  %v978_v9 = vsel %vm976_vm14, %v977_v29, %v975_v5  ;;  %v1021_v7 = vmul.f32 %v1020_v43, %v2143_v53  ;;  %v924_v61 = vmul.f32 %v1253_v26, %v923_v62  ;;  %v591_v43 = vld [vmem:[#allocation3 + $0x18] sm:$0xff] }
 0x195   :  { %1144 = vst.msk [vmem:[%s2434_s7 + $0x48] sm:$0xff] %vm30_vm7, %v1128_v15  ;;  %v2220_v30 = vmax.f32 %v650_v32, 1e-12  ;;  %v703_v52 = vsel %vm702_vm3, %v2096_v20, %v701_v49  ;;  %v1093_v48 = vsub.f32 %v754_v63, %v978_v9  ;;  %v2225_v28 = vmax.f32 %v654_v54, 1e-12  ;;  %v603_v58 = vld [vmem:[#allocation3 + $0x78] sm:$0xff]  ;;  %v538_v32 = vpop.xlane.xlu2 %537 }
 0x196   :  { %v795_v50 = vsub.f32 1.5, %v794_v6  ;;  %v842_v4 = vmul.f32 0.5, %v841_v22  ;;  %v925_v31 = vmul.f32 %v924_v61, %v2148_v24  ;;  %vm926_vm15 = vcmp.eq.f32.partialorder %v2148_v24, inf }
 0x197   :  { %vm928_vm9 = vcmp.eq.f32.partialorder %v2148_v24, 0.0  ;;  %v1109_v13 = vadd.f32 0.3, %v1093_v48  ;;  %v929_v33 = vand.u32 2147483648, %v2148_v24  ;;  %vm798_vm8 = vcmp.eq.f32.partialorder %v2154_v8, inf }
 0x198   :  { %v796_v35 = vmul.f32 %v1255_v47, %v795_v50  ;;  %v2234_v34 = vpop.eup %1256  ;;  %v706_v26 = vsel %vm704_vm13, %v705_v19, %v703_v52  ;;  %v1023_v36 = vsel %vm1022_vm5, %v2143_v53, %v1021_v7  ;;  %v927_v37 = vsel %vm926_vm15, %v2148_v24, %v925_v31 }
 0x199   :  { %1258 = vrsqrt.f32 %v2220_v30  ;;  %v1125_v3 = vmax.f32 %v1109_v13, 0.0  ;;  %v930_v47 = vsel %vm928_vm9, %v929_v33, %v927_v37  ;;  %vm800_vm0 = vcmp.eq.f32.partialorder %v2154_v8, 0.0 }
 0x19a   :  { %v797_v27 = vmul.f32 %v796_v35, %v2154_v8  ;;  %1260 = vrsqrt.f32 %v2225_v28  ;;  %v1089_v2 = vsub.f32 %v706_v26, %v930_v47  ;;  %v801_v20 = vand.u32 2147483648, %v2154_v8 }
 0x19b   :  { %v2249_v19 = vmax.f32 %v642_v21, 1e-12  ;;  %1141 = vst.msk [vmem:[%s2434_s7 + $0x30] sm:$0xff] %vm30_vm7, %v1125_v3  ;;  %v980_v18 = vmul.f32 %v2234_v34, %v2179_v10  ;;  %v2260_v51 = vmax.f32 %v874_v44, 1e-12  ;;  %v617_v42 = vmin.f32 %v601_v45, %v534_v23 }
 0x19c   :  { %v799_v24 = vsel %vm798_vm8, %v2154_v8, %v797_v27  ;;  %v1026_v38 = vsel %vm1024_vm12, %v1025_v59, %v1023_v36  ;;  %v1105_v11 = vadd.f32 0.3, %v1089_v2  ;;  %v843_v39 = vsub.f32 1.5, %v842_v4 }
 0x19d   :  { %v802_v56 = vsel %vm800_vm0, %v801_v20, %v799_v24  ;;  %1262 = vrsqrt.f32 %v2249_v19  ;;  %633 = vst.msk [vmem:[#allocation3 + $0x68] sm:$0xff] %vm30_vm7, %v617_v42  ;;  %v832_v15 = vmul.f32 %v2093_v17, %v831_v1  ;;  %v981_v22 = vmul.f32 %v2234_v34, %v980_v18 }
 0x19e   :  { %v1097_v29 = vsub.f32 %v802_v56, %v1026_v38  ;;  %v1121_v8 = vmax.f32 %v1105_v11, 0.0  ;;  %1264 = vrsqrt.f32 %v2260_v51  ;;  %v562_v62 = vmax.f32 %v546_v41, %v2181_v40 }
 0x19f   :  { %v1259_v46 = vpop.eup %1258  ;;  %v844_v54 = vmul.f32 %v2171_v25, %v843_v39  ;;  %v618_v59 = vmin.f32 %v602_v12, %v536_v57  ;;  %v607_v17 = vmin.f32 %v591_v43, %v2227_v14  ;;  %v619_v1 = vmin.f32 %v603_v58, %v538_v32 }
 0x1a0   :  { %v2267_v49 = vpop.eup %1260  ;;  %v1113_v60 = vadd.f32 0.3, %v1097_v29  ;;  %v804_v53 = vmul.f32 %v1259_v46, %v2220_v30  ;;  %1137 = vst.msk [vmem:[%s2434_s7 + $0x10] sm:$0xff] %vm30_vm7, %v1121_v8  ;;  %v833_v7 = vmul.f32 %v832_v15, %v2038_v0  ;;  %v982_v61 = vmul.f32 0.5, %v981_v22 }
 0x1a1   :  { %v852_v55 = vmul.f32 %v2267_v49, %v2225_v28  ;;  %579 = vst.msk [vmem:[#allocation2 + $0x38] sm:$0xff] %vm30_vm7, %v562_v62  ;;  %v845_v48 = vmul.f32 %v844_v54, %v2137_v16  ;;  %vm834_vm4 = vcmp.eq.f32.partialorder %v2038_v0, inf  ;;  %vm846_vm1 = vcmp.eq.f32.partialorder %v2137_v16, inf }
 0x1a2   :  { %v1129_v63 = vmax.f32 %v1113_v60, 0.0  ;;  %v805_v5 = vmul.f32 %v1259_v46, %v804_v53  ;;  %634 = vst.msk [vmem:[#allocation3 + $0x70] sm:$0xff] %vm30_vm7, %v618_v59  ;;  %v835_v21 = vsel %vm834_vm4, %v2038_v0, %v833_v7  ;;  %v983_v26 = vsub.f32 1.5, %v982_v61 }
 0x1a3   :  { %v2280_v6 = vpop.eup %1262  ;;  %623 = vst.msk [vmem:[#allocation3 + $0x18] sm:$0xff] %vm30_vm7, %v607_v17  ;;  %v853_v4 = vmul.f32 %v2267_v49, %v852_v55  ;;  %vm836_vm6 = vcmp.eq.f32.partialorder %v2038_v0, 0.0  ;;  %v837_v36 = vand.u32 2147483648, %v2038_v0  ;;  %v847_v37 = vsel %vm846_vm1, %v2137_v16, %v845_v48 }
 0x1a4   :  { %1145 = vst.msk [vmem:[%s2434_s7 + $0x50] sm:$0xff] %vm30_vm7, %v1129_v63  ;;  %v806_v40 = vmul.f32 0.5, %v805_v5  ;;  %v708_v25 = vmul.f32 %v2280_v6, %v2249_v19  ;;  %v1265_v9 = vpop.eup %1264  ;;  %v876_v52 = vld [vmem:[#allocation3 + $0x68] sm:$0xff]  ;;  %v849_v23 = vand.u32 2147483648, %v2137_v16  ;;  %vm848_vm11 = vcmp.eq.f32.partialorder %v2137_v16, 0.0 }
 0x1a5   :  { %v1028_v14 = vmul.f32 %v1265_v9, %v2260_v51  ;;  %v2299_v13 = vmax.f32 %v876_v52, 1e-12  ;;  %635 = vst.msk [vmem:[#allocation3 + $0x78] sm:$0xff] %vm30_vm7, %v619_v1  ;;  %v854_v3 = vmul.f32 0.5, %v853_v4  ;;  %v2312_v2 = vsel %vm836_vm6, %v837_v36, %v835_v21 }
 0x1a6   :  { %v807_v50 = vsub.f32 1.5, %v806_v40  ;;  %v709_v31 = vmul.f32 %v2280_v6, %v708_v25  ;;  %v2316_v42 = vsel %vm848_vm11, %v849_v23, %v847_v37  ;;  %v984_v0 = vmul.f32 %v2234_v34, %v983_v26 }
 0x1a7   :  { %v1029_v35 = vmul.f32 %v1265_v9, %v1028_v14  ;;  %1266 = vrsqrt.f32 %v2299_v13  ;;  %vm986_vm10 = vcmp.eq.f32.partialorder %v2179_v10, inf  ;;  %vm810_vm2 = vcmp.eq.f32.partialorder %v2220_v30, inf }
 0x1a8   :  { %v808_v33 = vmul.f32 %v1259_v46, %v807_v50  ;;  %v646_v45 = vld [vmem:[#allocation2 + $0x38] sm:$0xff]  ;;  %v710_v47 = vmul.f32 0.5, %v709_v31  ;;  %vm812_vm3 = vcmp.eq.f32.partialorder %v2220_v30, 0.0  ;;  %v855_v29 = vsub.f32 1.5, %v854_v3 }
 0x1a9   :  { %v1030_v44 = vmul.f32 0.5, %v1029_v35  ;;  %v2310_v27 = vmax.f32 %v646_v45, 1e-12  ;;  %v877_v18 = vld [vmem:[#allocation3 + $0x70] sm:$0xff]  ;;  %vm988_vm13 = vcmp.eq.f32.partialorder %v2179_v10, 0.0  ;;  %v985_v60 = vmul.f32 %v984_v0, %v2179_v10 }
 0x1aa   :  { %v809_v20 = vmul.f32 %v808_v33, %v2220_v30  ;;  %v866_v38 = vld [vmem:[#allocation3 + $0x18] sm:$0xff]  ;;  %v2323_v56 = vmax.f32 %v877_v18, 1e-12  ;;  %v711_v41 = vsub.f32 1.5, %v710_v47  ;;  %v813_v53 = vand.u32 2147483648, %v2220_v30 }
 0x1ab   :  { %v1031_v24 = vsub.f32 1.5, %v1030_v44  ;;  %1268 = vrsqrt.f32 %v2310_v27  ;;  %v2325_v46 = vmax.f32 %v866_v38, 1e-12  ;;  %vm1034_vm14 = vcmp.eq.f32.partialorder %v2260_v51, inf }
 0x1ac   :  { %v878_v16 = vld [vmem:[#allocation3 + $0x78] sm:$0xff]  ;;  %v811_v34 = vsel %vm810_vm2, %v2220_v30, %v809_v20  ;;  %1270 = vrsqrt.f32 %v2323_v56  ;;  %v1037_v43 = vand.u32 2147483648, %v2260_v51  ;;  %vm1036_vm5 = vcmp.eq.f32.partialorder %v2260_v51, 0.0 }
 0x1ad   :  { %v1032_v11 = vmul.f32 %v1265_v9, %v1031_v24  ;;  %v1267_v39 = vpop.eup %1266  ;;  %v2327_v8 = vmax.f32 %v878_v16, 1e-12  ;;  %1272 = vrsqrt.f32 %v2325_v46  ;;  %v856_v22 = vmul.f32 %v2267_v49, %v855_v29 }
 0x1ae   :  { %v1052_v57 = vmul.f32 %v1267_v39, %v2299_v13  ;;  %v814_v62 = vsel %vm812_vm3, %v813_v53, %v811_v34  ;;  %v712_v63 = vmul.f32 %v2280_v6, %v711_v41  ;;  %vm858_vm12 = vcmp.eq.f32.partialorder %v2225_v28, inf }
 0x1af   :  { %v1033_v12 = vmul.f32 %v1032_v11, %v2260_v51  ;;  %1274 = vrsqrt.f32 %v2327_v8  ;;  %v861_v17 = vand.u32 2147483648, %v2225_v28  ;;  %vm714_vm15 = vcmp.eq.f32.partialorder %v2249_v19, inf }
 0x1b0   :  { %v1053_v32 = vmul.f32 %v1267_v39, %v1052_v57  ;;  %v987_v30 = vsel %vm986_vm10, %v2179_v10, %v985_v60  ;;  %v857_v25 = vmul.f32 %v856_v22, %v2225_v28  ;;  %vm716_vm9 = vcmp.eq.f32.partialorder %v2249_v19, 0.0 }
 0x1b1   :  { %v1035_v58 = vsel %vm1034_vm14, %v2260_v51, %v1033_v12  ;;  %v1269_v15 = vpop.eup %1268  ;;  %v989_v51 = vand.u32 2147483648, %v2179_v10  ;;  %v717_v9 = vand.u32 2147483648, %v2249_v19  ;;  %v713_v52 = vmul.f32 %v712_v63, %v2249_v19 }
 0x1b2   :  { %v1038_v54 = vsel %vm1036_vm5, %v1037_v43, %v1035_v58  ;;  %v1054_v59 = vmul.f32 0.5, %v1053_v32  ;;  %v756_v55 = vmul.f32 %v1269_v15, %v2310_v27  ;;  %v1271_v49 = vpop.eup %1270  ;;  %vm1058_vm8 = vcmp.eq.f32.partialorder %v2299_v13, inf }
 0x1b3   :  { %v1098_v5 = vsub.f32 %v814_v62, %v1038_v54  ;;  %v1064_v7 = vmul.f32 %v1271_v49, %v2323_v56  ;;  %v1273_v61 = vpop.eup %1272  ;;  %v990_v31 = vsel %vm988_vm13, %v989_v51, %v987_v30  ;;  %vm1060_vm0 = vcmp.eq.f32.partialorder %v2299_v13, 0.0 }
 0x1b4   :  { %v1055_v40 = vsub.f32 1.5, %v1054_v59  ;;  %v757_v6 = vmul.f32 %v1269_v15, %v756_v55  ;;  %v932_v35 = vmul.f32 %v1273_v61, %v2325_v46  ;;  %v859_v10 = vsel %vm858_vm12, %v2225_v28, %v857_v25 }
 0x1b5   :  { %v1114_v1 = vadd.f32 0.3, %v1098_v5  ;;  %v1275_v4 = vpop.eup %1274  ;;  %v1065_v33 = vmul.f32 %v1271_v49, %v1064_v7  ;;  %v1061_v37 = vand.u32 2147483648, %v2299_v13  ;;  %v715_v23 = vsel %vm714_vm15, %v2249_v19, %v713_v52 }
 0x1b6   :  { %v1056_v50 = vmul.f32 %v1267_v39, %v1055_v40  ;;  %v758_v14 = vmul.f32 0.5, %v757_v6  ;;  %v1076_v36 = vmul.f32 %v1275_v4, %v2327_v8  ;;  %v933_v45 = vmul.f32 %v1273_v61, %v932_v35 }
 0x1b7   :  { %v1130_v48 = vmax.f32 %v1114_v1, 0.0  ;;  %v1066_v44 = vmul.f32 0.5, %v1065_v33  ;;  %vm762_vm4 = vcmp.eq.f32.partialorder %v2310_v27, inf  ;;  %vm860_vm1 = vcmp.eq.f32.partialorder %v2225_v28, 0.0 }
 0x1b8   :  { %v1057_v21 = vmul.f32 %v1056_v50, %v2299_v13  ;;  %v759_v26 = vsub.f32 1.5, %v758_v14  ;;  %v1077_v20 = vmul.f32 %v1275_v4, %v1076_v36  ;;  %v934_v0 = vmul.f32 0.5, %v933_v45 }
 0x1b9   :  { %1146 = vst.msk [vmem:[%s2434_s7 + $0x58] sm:$0xff] %vm30_vm7, %v1130_v48  ;;  %v1067_v18 = vsub.f32 1.5, %v1066_v44  ;;  %vm764_vm6 = vcmp.eq.f32.partialorder %v2310_v27, 0.0  ;;  %v718_v39 = vsel %vm716_vm9, %v717_v9, %v715_v23  ;;  %vm1070_vm11 = vcmp.eq.f32.partialorder %v2323_v56, inf }
 0x1ba   :  { %v1059_v3 = vsel %vm1058_vm8, %v2299_v13, %v1057_v21  ;;  %v760_v47 = vmul.f32 %v1269_v15, %v759_v26  ;;  %v1078_v16 = vmul.f32 0.5, %v1077_v20  ;;  %v765_v13 = vand.u32 2147483648, %v2310_v27 }
 0x1bb   :  { %v1062_v24 = vsel %vm1060_vm0, %v1061_v37, %v1059_v3  ;;  %v1068_v29 = vmul.f32 %v1271_v49, %v1067_v18  ;;  %v935_v41 = vsub.f32 1.5, %v934_v0  ;;  %vm1072_vm10 = vcmp.eq.f32.partialorder %v2323_v56, 0.0 }
 0x1bc   :  { %v1100_v38 = vsub.f32 %v2312_v2, %v1062_v24  ;;  %v761_v11 = vmul.f32 %v760_v47, %v2310_v27  ;;  %v1079_v57 = vsub.f32 1.5, %v1078_v16  ;;  %v1073_v19 = vand.u32 2147483648, %v2323_v56 }
 0x1bd   :  { %v1069_v2 = vmul.f32 %v1068_v29, %v2323_v56  ;;  %v936_v53 = vmul.f32 %v1273_v61, %v935_v41  ;;  %vm938_vm2 = vcmp.eq.f32.partialorder %v2325_v46, inf  ;;  %vm940_vm3 = vcmp.eq.f32.partialorder %v2325_v46, 0.0 }
 0x1be   :  { %v1116_v34 = vadd.f32 0.3, %v1100_v38  ;;  %v763_v12 = vsel %vm762_vm4, %v2310_v27, %v761_v11  ;;  %v1080_v32 = vmul.f32 %v1275_v4, %v1079_v57  ;;  %v941_v54 = vand.u32 2147483648, %v2325_v46 }
 0x1bf   :  { %v766_v60 = vsel %vm764_vm6, %v765_v13, %v763_v12  ;;  %v1071_v15 = vsel %vm1070_vm11, %v2323_v56, %v1069_v2  ;;  %v937_v22 = vmul.f32 %v936_v53, %v2325_v46  ;;  %vm1082_vm13 = vcmp.eq.f32.partialorder %v2327_v8, inf }
 0x1c0   :  { %v1132_v43 = vmax.f32 %v1116_v34, 0.0  ;;  %v1094_v58 = vsub.f32 %v766_v60, %v990_v31  ;;  %v1074_v62 = vsel %vm1072_vm10, %v1073_v19, %v1071_v15  ;;  %v1081_v63 = vmul.f32 %v1080_v32, %v2327_v8 }
 0x1c1   :  { %v1101_v5 = vsub.f32 %v2316_v42, %v1074_v62  ;;  %v939_v56 = vsel %vm938_vm2, %v2325_v46, %v937_v22  ;;  %v1085_v59 = vand.u32 2147483648, %v2327_v8  ;;  %vm1084_vm14 = vcmp.eq.f32.partialorder %v2327_v8, 0.0 }
 0x1c2   :  { %1148 = vst.msk [vmem:[%s2434_s7 + $0x68] sm:$0xff] %vm30_vm7, %v1132_v43  ;;  %v1110_v27 = vadd.f32 0.3, %v1094_v58  ;;  %v942_v51 = vsel %vm940_vm3, %v941_v54, %v939_v56  ;;  %v1083_v49 = vsel %vm1082_vm13, %v2327_v8, %v1081_v63  ;;  %v862_v30 = vsel %vm860_vm1, %v861_v17, %v859_v10 }
 0x1c3   :  { %v1117_v1 = vadd.f32 0.3, %v1101_v5  ;;  %v1090_v40 = vsub.f32 %v718_v39, %v942_v51  ;;  %v1086_v42 = vsel %vm1084_vm14, %v1085_v59, %v1083_v49 }
 0x1c4   :  { %v1126_v55 = vmax.f32 %v1110_v27, 0.0  ;;  %v1102_v46 = vsub.f32 %v862_v30, %v1086_v42 }
 0x1c5   :  { %v1133_v6 = vmax.f32 %v1117_v1, 0.0  ;;  %v1106_v25 = vadd.f32 0.3, %v1090_v40 }
 0x1c6   :  { %1142 = vst.msk [vmem:[%s2434_s7 + $0x38] sm:$0xff] %vm30_vm7, %v1126_v55  ;;  %v1118_v9 = vadd.f32 0.3, %v1102_v46 }
 0x1c7   :  { %1149 = vst.msk [vmem:[%s2434_s7 + $0x70] sm:$0xff] %vm30_vm7, %v1133_v6  ;;  %v1122_v8 = vmax.f32 %v1106_v25, 0.0 }
 0x1c8   :  { %v1134_v28 = vmax.f32 %v1118_v9, 0.0 }
 0x1c9   :  { %1138 = vst.msk [vmem:[%s2434_s7 + $0x18] sm:$0xff] %vm30_vm7, %v1122_v8 }
 0x1ca   :  { %1150 = vst.msk [vmem:[%s2434_s7 + $0x78] sm:$0xff] %vm30_vm7, %v1134_v28 }

</bundles_post_ra>
